<compile_context>
chip_gen: v7x
topology: tpu7x:2x2x1
jax: 0.10.0
libtpu: 0.0.40
codegen_flags: <defaults>
</compile_context>

<pallas_src>
import jax
import jax.numpy as jnp
from jax import lax
from jax.experimental import pallas as pl
from jax.experimental.pallas import tpu as pltpu


def _leaky_relu(x, slope=0.2):
    return jnp.where(x > 0, x, slope * x)


def statistic_network_kernel(
    x_ref,                       # [tile_m, D]  f32 (batch-major, straight from HBM)
    w1_ref, b1_ref,              # [D2, D]  bf16 , [D2, 1] f32
    w2_ref, b2_ref,              # [D,  D2] bf16 , [D,  1] f32
    w3_ref, b3_ref,              # [D,  D ] bf16 , [D,  1] f32
    w4_ref, b4_ref,              # [D4, D ] bf16 , [D4, 1] f32
    w5_ref, b5_ref,              # [D4, D4] bf16 , [D4, 1] f32
    w6_ref, b6_ref,              # [D4, 1]  f32  , [1,  1] f32
    out_ref,                     # [1, tile_m] f32 (lane-dense)
):
    # In-kernel cast (VPU).  The transpose to [features, batch] is folded into the
    # first matmul by contracting the feature axes of W1 [D2, D] and x [tile_m, D].
    x_lp = x_ref[...].astype(w1_ref.dtype)                       # [tile_m, D] bf16
    y = lax.dot_general(w1_ref[...], x_lp,
                        dimension_numbers=(((1,), (1,)), ((), ())),
                        preferred_element_type=jnp.float32)      # [D2, tile_m] f32
    y = _leaky_relu(y + b1_ref[...])
    h = y.astype(w1_ref.dtype)

    # Hidden layers 2..5: MXU matmul (bf16 in, f32 accumulate), bias + LeakyReLU in f32.
    for w_ref, b_ref in ((w2_ref, b2_ref), (w3_ref, b3_ref),
                         (w4_ref, b4_ref), (w5_ref, b5_ref)):
        y = jnp.dot(w_ref[...], h, preferred_element_type=jnp.float32)
        y = _leaky_relu(y + b_ref[...])
        h = y.astype(w_ref.dtype)

    # Final 1-unit layer: VPU multiply + sublane (XLU) reduction -> lane-dense row.
    z = jnp.sum(w6_ref[...] * h.astype(jnp.float32), axis=0, keepdims=True)
    z = z + b6_ref[...]
    out_ref[...] = jax.nn.sigmoid(z).astype(out_ref.dtype)


def _round_up(n, m):
    return ((n + m - 1) // m) * m


def _prepare_params(params, param_dtype, feature_pad=32):
    """params: list of (W [out,in], b [out]) in torch.nn.Linear layout.

    Zero-pads every feature dim (except the final out=1) to a multiple of
    `feature_pad` so bf16 sublane packing / MXU feeds stay on full tiles.
    Returns (flat_param_list, padded_input_dim)."""
    n = len(params)
    flat = []
    d_in_pad_first = None
    for idx, (w, b) in enumerate(params):
        w = jnp.asarray(w, jnp.float32)
        b = jnp.asarray(b, jnp.float32)
        out_f, in_f = w.shape
        in_p = _round_up(in_f, feature_pad)
        out_p = out_f if idx == n - 1 else _round_up(out_f, feature_pad)
        if idx == 0:
            d_in_pad_first = in_p
        w_p = jnp.zeros((out_p, in_p), jnp.float32).at[:out_f, :in_f].set(w)
        b_p = jnp.zeros((out_p,), jnp.float32).at[:out_f].set(b)
        if idx < n - 1:
            flat.append(w_p.astype(param_dtype))                  # [out_p, in_p] bf16
            flat.append(b_p.reshape(out_p, 1))                    # [out_p, 1]    f32
        else:
            # single-output head: keep f32, store as a column for the in-kernel
            # VPU multiply + sublane reduction.
            flat.append(w_p.T)                                    # [in_p, 1]     f32
            flat.append(b_p.reshape(1, 1))                        # [1, 1]        f32
    return flat, d_in_pad_first


def _pick_tile_m(b_pad, target):
    """Largest lane-aligned tile <= target that divides b_pad, preferring >= 2
    grid steps so the 'parallel' axis can shard across v7x's two TensorCores."""
    target = max(128, min(target, b_pad))
    cands = [t for t in range(128, target + 1, 128) if b_pad % t == 0]
    multi = [t for t in cands if b_pad // t >= 2]
    return max(multi) if multi else max(cands)


def _vmem_limit_bytes(flat_params, d_pad, tile_m):
    def nbytes(a):
        return a.size * jnp.dtype(a.dtype).itemsize

    resident = sum(nbytes(p) for p in flat_params)          # single-buffered weights
    streamed = 2 * (tile_m * d_pad * 4 + tile_m * 4)        # double-buffered x / out tiles
    scratch = 3 * d_pad * tile_m * 4                        # f32 layer intermediates
    # Budget generously enough that the double-buffered fallback also compiles.
    want = int(1.5 * (2 * resident + streamed + scratch))

    try:
        cap = int(pltpu.get_tpu_info().vmem_capacity_bytes)
    except Exception:
        cap = 64 * 1024 * 1024                              # safe minimum (v7x per-TC)
    usable = cap - 8 * 1024 * 1024

    if resident > int(0.75 * usable):
        # TODO(synk): weight-streaming path (pltpu.emit_pipeline over K-tiles of the
        # big layers) for input_dim too large to keep weights VMEM-resident.
        raise NotImplementedError(
            f"resident weights ({resident} B) exceed ~75% of usable VMEM ({usable} B)")

    return min(usable, max(32 * 1024 * 1024, want))


def statistic_network(x, params, *, tile_m=None, param_dtype=jnp.bfloat16):
    """x: [B, input_dim] float32.  params: list of (W [out,in], b [out]) (torch layout)."""
    B, D = x.shape
    flat_params, d_pad = _prepare_params(params, param_dtype)

    b_pad = _round_up(B, 128)
    target = tile_m if tile_m is not None else 512
    tm = _pick_tile_m(b_pad, target)
    grid_m = b_pad // tm

    # Zero-pad once (batch -> multiple of 128, features -> d_pad); pad rows are
    # dropped from the output and pad feature columns hit all-zero weights.
    if (b_pad, d_pad) != (B, D):
        x_in = jnp.zeros((b_pad, d_pad), jnp.float32).at[:B, :D].set(
            x.astype(jnp.float32))
    else:
        x_in = x.astype(jnp.float32)

    vmem_limit = _vmem_limit_bytes(flat_params, d_pad, tm)

    def build_call(single_buffer_weights):
        in_specs = [pl.BlockSpec((tm, d_pad), lambda i: (i, 0))]
        for p in flat_params:
            idx_map = (lambda i, nd=p.ndim: (0,) * nd)      # resident: same block each step
            if single_buffer_weights:
                spec = pl.BlockSpec(p.shape, idx_map, pipeline_mode=pl.Buffered(1))
            else:
                spec = pl.BlockSpec(p.shape, idx_map)
            in_specs.append(spec)
        out_spec = pl.BlockSpec((1, tm), lambda i: (0, i))   # lane-dense output slab
        return pl.pallas_call(
            statistic_network_kernel,
            out_shape=jax.ShapeDtypeStruct((1, b_pad), jnp.float32),
            grid_spec=pltpu.PrefetchScalarGridSpec(
                num_scalar_prefetch=0,
                grid=(grid_m,),
                in_specs=in_specs,
                out_specs=out_spec,
            ),
            compiler_params=pltpu.CompilerParams(
                dimension_semantics=("parallel",),
                vmem_limit_bytes=vmem_limit,
            ),
        )

    try:
        out_t = build_call(True)(x_in, *flat_params)
    except Exception:
        # Fallback if this JAX build rejects single-buffered resident blocks.
        out_t = build_call(False)(x_in, *flat_params)

    return out_t[0, :B].reshape(B, 1)


def init_params(key, input_dim):
    """Deterministic init matching torch.nn.Linear default layout [out, in]."""
    dims = [
        (input_dim, input_dim // 2),
        (input_dim // 2, input_dim),
        (input_dim, input_dim),
        (input_dim, input_dim // 4),
        (input_dim // 4, input_dim // 4),
        (input_dim // 4, 1),
    ]
    params = []
    for fan_in, fan_out in dims:
        key, kw, kb = jax.random.split(key, 3)
        bound = 1.0 / jnp.sqrt(fan_in)
        w = jax.random.uniform(kw, (fan_out, fan_in), jnp.float32, -bound, bound)
        b = jax.random.uniform(kb, (fan_out,), jnp.float32, -bound, bound)
        params.append((w, b))
    return params


def reference_forward(x, params, param_dtype=jnp.bfloat16):
    """Pure-JAX reference mirroring the kernel's mixed-precision policy."""
    n = len(params)
    h = x.astype(param_dtype)
    z = None
    for idx, (w, b) in enumerate(params):
        if idx < n - 1:
            y = jnp.dot(h, w.T.astype(param_dtype),
                        preferred_element_type=jnp.float32) + b[None, :]
            h = jnp.where(y > 0, y, 0.2 * y).astype(param_dtype)
        else:
            z = jnp.dot(h.astype(jnp.float32), w.T) + b[None, :]
    return jax.nn.sigmoid(z)


def reference_forward_f32(x, params):
    """Full-f32 reference = original module semantics (eval-mode dropout)."""
    h = x
    n = len(params)
    for idx, (w, b) in enumerate(params):
        h = h @ w.T + b[None, :]
        if idx < n - 1:
            h = jnp.where(h > 0, h, 0.2 * h)
    return jax.nn.sigmoid(h)


if __name__ == "__main__":
    key = jax.random.PRNGKey(0)
    input_dim = 64
    batch = 256      # two lane-aligned tiles of 128 -> grid=(2,), shards across v7x TCs

    kx, kp = jax.random.split(key)
    x = jax.random.normal(kx, (batch, input_dim), jnp.float32)
    params = init_params(kp, input_dim)

    out = statistic_network(x, params)
    out = jax.block_until_ready(out)
    assert out.shape == (batch, 1)

    ref = reference_forward(x, params)
    assert jnp.allclose(out, ref, atol=2e-3, rtol=2e-3), \
        "mismatch vs matched-precision pure-JAX reference"

    ref32 = reference_forward_f32(x, params)
    assert jnp.allclose(out, ref32, atol=3e-2, rtol=3e-2), \
        "drifted from full-f32 module semantics"

    print("KERNEL_OK")
</pallas_src>

<mosaic_0001>
module attributes {stable_mosaic.version = 11 : i64} {
  func.func @statistic_network_kernel(%arg0: i32, %arg1: memref<128x64xf32, #tpu.memory_space<vmem>>, %arg2: memref<32x64xbf16, #tpu.memory_space<vmem>>, %arg3: memref<32x1xf32, #tpu.memory_space<vmem>>, %arg4: memref<64x32xbf16, #tpu.memory_space<vmem>>, %arg5: memref<64x1xf32, #tpu.memory_space<vmem>>, %arg6: memref<64x64xbf16, #tpu.memory_space<vmem>>, %arg7: memref<64x1xf32, #tpu.memory_space<vmem>>, %arg8: memref<32x64xbf16, #tpu.memory_space<vmem>>, %arg9: memref<32x1xf32, #tpu.memory_space<vmem>>, %arg10: memref<32x32xbf16, #tpu.memory_space<vmem>>, %arg11: memref<32x1xf32, #tpu.memory_space<vmem>>, %arg12: memref<32x1xf32, #tpu.memory_space<vmem>>, %arg13: memref<1x1xf32, #tpu.memory_space<vmem>>, %arg14: memref<1x128xf32, #tpu.memory_space<vmem>>) attributes {dimension_semantics = [#tpu.dimension_semantics<parallel>], iteration_bounds = array<i64: 2>, scalar_prefetch = 0 : i64, scratch_operands = 0 : i64, tpu.core_type = #tpu.core_type<tc>, window_params = [{transform_indices = @transform_0, window_bounds = array<i64: 128, 64>}, {pipeline_mode = #tpu.pipeline_mode<synchronous>, transform_indices = @transform_1, window_bounds = array<i64: 32, 64>}, {pipeline_mode = #tpu.pipeline_mode<synchronous>, transform_indices = @transform_2, window_bounds = array<i64: 32, 1>}, {pipeline_mode = #tpu.pipeline_mode<synchronous>, transform_indices = @transform_3, window_bounds = array<i64: 64, 32>}, {pipeline_mode = #tpu.pipeline_mode<synchronous>, transform_indices = @transform_4, window_bounds = array<i64: 64, 1>}, {pipeline_mode = #tpu.pipeline_mode<synchronous>, transform_indices = @transform_5, window_bounds = array<i64: 64, 64>}, {pipeline_mode = #tpu.pipeline_mode<synchronous>, transform_indices = @transform_6, window_bounds = array<i64: 64, 1>}, {pipeline_mode = #tpu.pipeline_mode<synchronous>, transform_indices = @transform_7, window_bounds = array<i64: 32, 64>}, {pipeline_mode = #tpu.pipeline_mode<synchronous>, transform_indices = @transform_8, window_bounds = array<i64: 32, 1>}, {pipeline_mode = #tpu.pipeline_mode<synchronous>, transform_indices = @transform_9, window_bounds = array<i64: 32, 32>}, {pipeline_mode = #tpu.pipeline_mode<synchronous>, transform_indices = @transform_10, window_bounds = array<i64: 32, 1>}, {pipeline_mode = #tpu.pipeline_mode<synchronous>, transform_indices = @transform_11, window_bounds = array<i64: 32, 1>}, {pipeline_mode = #tpu.pipeline_mode<synchronous>, transform_indices = @transform_12, window_bounds = array<i64: 1, 1>}, {transform_indices = @transform_13, window_bounds = array<i64: 1, 128>}]} {
    %c0 = arith.constant 0 : index
    %c0_0 = arith.constant 0 : index
    %0 = vector.load %arg1[%c0, %c0_0] : memref<128x64xf32, #tpu.memory_space<vmem>>, vector<128x64xf32>
    %1 = arith.truncf %0 : vector<128x64xf32> to vector<128x64xbf16>
    %c0_1 = arith.constant 0 : index
    %c0_2 = arith.constant 0 : index
    %2 = vector.load %arg2[%c0_1, %c0_2] : memref<32x64xbf16, #tpu.memory_space<vmem>>, vector<32x64xbf16>
    %cst = arith.constant dense<0.000000e+00> : vector<32x128xf32>
    %3 = tpu.matmul %2, %1, %cst {dimension_numbers = #tpu.dot_dimension_numbers<[1], [1], [0], [0], [0, 0, 1, 0], [], []>} : vector<32x64xbf16>, vector<128x64xbf16>, vector<32x128xf32> -> vector<32x128xf32>
    %c0_3 = arith.constant 0 : index
    %c0_4 = arith.constant 0 : index
    %4 = vector.load %arg3[%c0_3, %c0_4] : memref<32x1xf32, #tpu.memory_space<vmem>>, vector<32x1xf32>
    %5 = vector.broadcast %4 : vector<32x1xf32> to vector<32x128xf32>
    %6 = arith.addf %3, %5 : vector<32x128xf32>
    %cst_5 = arith.constant 0.000000e+00 : f32
    %7 = vector.broadcast %cst_5 : f32 to vector<32x128xf32>
    %8 = arith.cmpf ogt, %6, %7 : vector<32x128xf32>
    %cst_6 = arith.constant 2.000000e-01 : f32
    %9 = vector.broadcast %cst_6 : f32 to vector<32x128xf32>
    %10 = arith.mulf %9, %6 : vector<32x128xf32>
    %11 = arith.select %8, %6, %10 : vector<32x128xi1>, vector<32x128xf32>
    %12 = arith.truncf %11 : vector<32x128xf32> to vector<32x128xbf16>
    %c0_7 = arith.constant 0 : index
    %c0_8 = arith.constant 0 : index
    %13 = vector.load %arg4[%c0_7, %c0_8] : memref<64x32xbf16, #tpu.memory_space<vmem>>, vector<64x32xbf16>
    %cst_9 = arith.constant dense<0.000000e+00> : vector<64x128xf32>
    %14 = tpu.matmul %13, %12, %cst_9 {dimension_numbers = #tpu.dot_dimension_numbers<[1], [0], [0], [1], [0, 0, 1, 1], [], []>} : vector<64x32xbf16>, vector<32x128xbf16>, vector<64x128xf32> -> vector<64x128xf32>
    %c0_10 = arith.constant 0 : index
    %c0_11 = arith.constant 0 : index
    %15 = vector.load %arg5[%c0_10, %c0_11] : memref<64x1xf32, #tpu.memory_space<vmem>>, vector<64x1xf32>
    %16 = vector.broadcast %15 : vector<64x1xf32> to vector<64x128xf32>
    %17 = arith.addf %14, %16 : vector<64x128xf32>
    %cst_12 = arith.constant 0.000000e+00 : f32
    %18 = vector.broadcast %cst_12 : f32 to vector<64x128xf32>
    %19 = arith.cmpf ogt, %17, %18 : vector<64x128xf32>
    %cst_13 = arith.constant 2.000000e-01 : f32
    %20 = vector.broadcast %cst_13 : f32 to vector<64x128xf32>
    %21 = arith.mulf %20, %17 : vector<64x128xf32>
    %22 = arith.select %19, %17, %21 : vector<64x128xi1>, vector<64x128xf32>
    %23 = arith.truncf %22 : vector<64x128xf32> to vector<64x128xbf16>
    %c0_14 = arith.constant 0 : index
    %c0_15 = arith.constant 0 : index
    %24 = vector.load %arg6[%c0_14, %c0_15] : memref<64x64xbf16, #tpu.memory_space<vmem>>, vector<64x64xbf16>
    %cst_16 = arith.constant dense<0.000000e+00> : vector<64x128xf32>
    %25 = tpu.matmul %24, %23, %cst_16 {dimension_numbers = #tpu.dot_dimension_numbers<[1], [0], [0], [1], [0, 0, 1, 1], [], []>} : vector<64x64xbf16>, vector<64x128xbf16>, vector<64x128xf32> -> vector<64x128xf32>
    %c0_17 = arith.constant 0 : index
    %c0_18 = arith.constant 0 : index
    %26 = vector.load %arg7[%c0_17, %c0_18] : memref<64x1xf32, #tpu.memory_space<vmem>>, vector<64x1xf32>
    %27 = vector.broadcast %26 : vector<64x1xf32> to vector<64x128xf32>
    %28 = arith.addf %25, %27 : vector<64x128xf32>
    %cst_19 = arith.constant 0.000000e+00 : f32
    %29 = vector.broadcast %cst_19 : f32 to vector<64x128xf32>
    %30 = arith.cmpf ogt, %28, %29 : vector<64x128xf32>
    %cst_20 = arith.constant 2.000000e-01 : f32
    %31 = vector.broadcast %cst_20 : f32 to vector<64x128xf32>
    %32 = arith.mulf %31, %28 : vector<64x128xf32>
    %33 = arith.select %30, %28, %32 : vector<64x128xi1>, vector<64x128xf32>
    %34 = arith.truncf %33 : vector<64x128xf32> to vector<64x128xbf16>
    %c0_21 = arith.constant 0 : index
    %c0_22 = arith.constant 0 : index
    %35 = vector.load %arg8[%c0_21, %c0_22] : memref<32x64xbf16, #tpu.memory_space<vmem>>, vector<32x64xbf16>
    %cst_23 = arith.constant dense<0.000000e+00> : vector<32x128xf32>
    %36 = tpu.matmul %35, %34, %cst_23 {dimension_numbers = #tpu.dot_dimension_numbers<[1], [0], [0], [1], [0, 0, 1, 1], [], []>} : vector<32x64xbf16>, vector<64x128xbf16>, vector<32x128xf32> -> vector<32x128xf32>
    %c0_24 = arith.constant 0 : index
    %c0_25 = arith.constant 0 : index
    %37 = vector.load %arg9[%c0_24, %c0_25] : memref<32x1xf32, #tpu.memory_space<vmem>>, vector<32x1xf32>
    %38 = vector.broadcast %37 : vector<32x1xf32> to vector<32x128xf32>
    %39 = arith.addf %36, %38 : vector<32x128xf32>
    %cst_26 = arith.constant 0.000000e+00 : f32
    %40 = vector.broadcast %cst_26 : f32 to vector<32x128xf32>
    %41 = arith.cmpf ogt, %39, %40 : vector<32x128xf32>
    %cst_27 = arith.constant 2.000000e-01 : f32
    %42 = vector.broadcast %cst_27 : f32 to vector<32x128xf32>
    %43 = arith.mulf %42, %39 : vector<32x128xf32>
    %44 = arith.select %41, %39, %43 : vector<32x128xi1>, vector<32x128xf32>
    %45 = arith.truncf %44 : vector<32x128xf32> to vector<32x128xbf16>
    %c0_28 = arith.constant 0 : index
    %c0_29 = arith.constant 0 : index
    %46 = vector.load %arg10[%c0_28, %c0_29] : memref<32x32xbf16, #tpu.memory_space<vmem>>, vector<32x32xbf16>
    %cst_30 = arith.constant dense<0.000000e+00> : vector<32x128xf32>
    %47 = tpu.matmul %46, %45, %cst_30 {dimension_numbers = #tpu.dot_dimension_numbers<[1], [0], [0], [1], [0, 0, 1, 1], [], []>} : vector<32x32xbf16>, vector<32x128xbf16>, vector<32x128xf32> -> vector<32x128xf32>
    %c0_31 = arith.constant 0 : index
    %c0_32 = arith.constant 0 : index
    %48 = vector.load %arg11[%c0_31, %c0_32] : memref<32x1xf32, #tpu.memory_space<vmem>>, vector<32x1xf32>
    %49 = vector.broadcast %48 : vector<32x1xf32> to vector<32x128xf32>
    %50 = arith.addf %47, %49 : vector<32x128xf32>
    %cst_33 = arith.constant 0.000000e+00 : f32
    %51 = vector.broadcast %cst_33 : f32 to vector<32x128xf32>
    %52 = arith.cmpf ogt, %50, %51 : vector<32x128xf32>
    %cst_34 = arith.constant 2.000000e-01 : f32
    %53 = vector.broadcast %cst_34 : f32 to vector<32x128xf32>
    %54 = arith.mulf %53, %50 : vector<32x128xf32>
    %55 = arith.select %52, %50, %54 : vector<32x128xi1>, vector<32x128xf32>
    %56 = arith.truncf %55 : vector<32x128xf32> to vector<32x128xbf16>
    %c0_35 = arith.constant 0 : index
    %c0_36 = arith.constant 0 : index
    %57 = vector.load %arg12[%c0_35, %c0_36] : memref<32x1xf32, #tpu.memory_space<vmem>>, vector<32x1xf32>
    %58 = arith.extf %56 : vector<32x128xbf16> to vector<32x128xf32>
    %59 = vector.broadcast %57 : vector<32x1xf32> to vector<32x128xf32>
    %60 = arith.mulf %59, %58 : vector<32x128xf32>
    %cst_37 = arith.constant dense<0.000000e+00> : vector<128xf32>
    %61 = vector.multi_reduction <add>, %60, %cst_37 [0] : vector<32x128xf32> to vector<128xf32>
    %62 = vector.shape_cast %61 : vector<128xf32> to vector<1x128xf32>
    %c0_38 = arith.constant 0 : index
    %c0_39 = arith.constant 0 : index
    %63 = vector.load %arg13[%c0_38, %c0_39] : memref<1x1xf32, #tpu.memory_space<vmem>>, vector<1x1xf32>
    %64 = vector.broadcast %63 : vector<1x1xf32> to vector<1x128xf32>
    %65 = arith.addf %62, %64 : vector<1x128xf32>
    %66 = arith.negf %65 : vector<1x128xf32>
    %67 = math.exp %66 : vector<1x128xf32>
    %cst_40 = arith.constant 1.000000e+00 : f32
    %68 = vector.broadcast %cst_40 : f32 to vector<1x128xf32>
    %69 = arith.addf %68, %67 : vector<1x128xf32>
    %70 = arith.divf %68, %69 : vector<1x128xf32>
    %c0_41 = arith.constant 0 : index
    %c0_42 = arith.constant 0 : index
    %71 = vector.load %arg14[%c0_41, %c0_42] : memref<1x128xf32, #tpu.memory_space<vmem>>, vector<1x128xf32>
    tpu.vector_store %arg14[%c0_41, %c0_42], %70 {strides = array<i32>} : memref<1x128xf32, #tpu.memory_space<vmem>>, vector<1x128xf32>,
    return
  }
  func.func @transform_0(%arg0: i32) -> (i32, i32) {
    %c0_i32 = arith.constant 0 : i32
    %c0_i32_0 = arith.constant 0 : i32
    return %arg0, %c0_i32 : i32, i32
  }
  func.func @transform_1(%arg0: i32) -> (i32, i32) {
    %c0_i32 = arith.constant 0 : i32
    %c0_i32_0 = arith.constant 0 : i32
    %c0_i32_1 = arith.constant 0 : i32
    return %c0_i32, %c0_i32_0 : i32, i32
  }
  func.func @transform_2(%arg0: i32) -> (i32, i32) {
    %c0_i32 = arith.constant 0 : i32
    %c0_i32_0 = arith.constant 0 : i32
    %c0_i32_1 = arith.constant 0 : i32
    return %c0_i32, %c0_i32_0 : i32, i32
  }
  func.func @transform_3(%arg0: i32) -> (i32, i32) {
    %c0_i32 = arith.constant 0 : i32
    %c0_i32_0 = arith.constant 0 : i32
    %c0_i32_1 = arith.constant 0 : i32
    return %c0_i32, %c0_i32_0 : i32, i32
  }
  func.func @transform_4(%arg0: i32) -> (i32, i32) {
    %c0_i32 = arith.constant 0 : i32
    %c0_i32_0 = arith.constant 0 : i32
    %c0_i32_1 = arith.constant 0 : i32
    return %c0_i32, %c0_i32_0 : i32, i32
  }
  func.func @transform_5(%arg0: i32) -> (i32, i32) {
    %c0_i32 = arith.constant 0 : i32
    %c0_i32_0 = arith.constant 0 : i32
    %c0_i32_1 = arith.constant 0 : i32
    return %c0_i32, %c0_i32_0 : i32, i32
  }
  func.func @transform_6(%arg0: i32) -> (i32, i32) {
    %c0_i32 = arith.constant 0 : i32
    %c0_i32_0 = arith.constant 0 : i32
    %c0_i32_1 = arith.constant 0 : i32
    return %c0_i32, %c0_i32_0 : i32, i32
  }
  func.func @transform_7(%arg0: i32) -> (i32, i32) {
    %c0_i32 = arith.constant 0 : i32
    %c0_i32_0 = arith.constant 0 : i32
    %c0_i32_1 = arith.constant 0 : i32
    return %c0_i32, %c0_i32_0 : i32, i32
  }
  func.func @transform_8(%arg0: i32) -> (i32, i32) {
    %c0_i32 = arith.constant 0 : i32
    %c0_i32_0 = arith.constant 0 : i32
    %c0_i32_1 = arith.constant 0 : i32
    return %c0_i32, %c0_i32_0 : i32, i32
  }
  func.func @transform_9(%arg0: i32) -> (i32, i32) {
    %c0_i32 = arith.constant 0 : i32
    %c0_i32_0 = arith.constant 0 : i32
    %c0_i32_1 = arith.constant 0 : i32
    return %c0_i32, %c0_i32_0 : i32, i32
  }
  func.func @transform_10(%arg0: i32) -> (i32, i32) {
    %c0_i32 = arith.constant 0 : i32
    %c0_i32_0 = arith.constant 0 : i32
    %c0_i32_1 = arith.constant 0 : i32
    return %c0_i32, %c0_i32_0 : i32, i32
  }
  func.func @transform_11(%arg0: i32) -> (i32, i32) {
    %c0_i32 = arith.constant 0 : i32
    %c0_i32_0 = arith.constant 0 : i32
    %c0_i32_1 = arith.constant 0 : i32
    return %c0_i32, %c0_i32_0 : i32, i32
  }
  func.func @transform_12(%arg0: i32) -> (i32, i32) {
    %c0_i32 = arith.constant 0 : i32
    %c0_i32_0 = arith.constant 0 : i32
    %c0_i32_1 = arith.constant 0 : i32
    return %c0_i32, %c0_i32_0 : i32, i32
  }
  func.func @transform_13(%arg0: i32) -> (i32, i32) {
    %c0_i32 = arith.constant 0 : i32
    %c0_i32_0 = arith.constant 0 : i32
    return %c0_i32, %arg0 : i32, i32
  }
}

module attributes {stable_mosaic.version = 11 : i64} {
  func.func @statistic_network_kernel(%arg0: i32, %arg1: memref<128x64xf32, #tpu.memory_space<vmem>>, %arg2: memref<32x64xbf16, #tpu.memory_space<vmem>>, %arg3: memref<32x1xf32, #tpu.memory_space<vmem>>, %arg4: memref<64x32xbf16, #tpu.memory_space<vmem>>, %arg5: memref<64x1xf32, #tpu.memory_space<vmem>>, %arg6: memref<64x64xbf16, #tpu.memory_space<vmem>>, %arg7: memref<64x1xf32, #tpu.memory_space<vmem>>, %arg8: memref<32x64xbf16, #tpu.memory_space<vmem>>, %arg9: memref<32x1xf32, #tpu.memory_space<vmem>>, %arg10: memref<32x32xbf16, #tpu.memory_space<vmem>>, %arg11: memref<32x1xf32, #tpu.memory_space<vmem>>, %arg12: memref<32x1xf32, #tpu.memory_space<vmem>>, %arg13: memref<1x1xf32, #tpu.memory_space<vmem>>, %arg14: memref<1x128xf32, #tpu.memory_space<vmem>>) attributes {dimension_semantics = [#tpu.dimension_semantics<parallel>], iteration_bounds = array<i64: 2>, scalar_prefetch = 0 : i64, scratch_operands = 0 : i64, tpu.core_type = #tpu.core_type<tc>, window_params = [{transform_indices = @transform_0, window_bounds = array<i64: 128, 64>}, {pipeline_mode = #tpu.pipeline_mode<synchronous>, transform_indices = @transform_1, window_bounds = array<i64: 32, 64>}, {pipeline_mode = #tpu.pipeline_mode<synchronous>, transform_indices = @transform_2, window_bounds = array<i64: 32, 1>}, {pipeline_mode = #tpu.pipeline_mode<synchronous>, transform_indices = @transform_3, window_bounds = array<i64: 64, 32>}, {pipeline_mode = #tpu.pipeline_mode<synchronous>, transform_indices = @transform_4, window_bounds = array<i64: 64, 1>}, {pipeline_mode = #tpu.pipeline_mode<synchronous>, transform_indices = @transform_5, window_bounds = array<i64: 64, 64>}, {pipeline_mode = #tpu.pipeline_mode<synchronous>, transform_indices = @transform_6, window_bounds = array<i64: 64, 1>}, {pipeline_mode = #tpu.pipeline_mode<synchronous>, transform_indices = @transform_7, window_bounds = array<i64: 32, 64>}, {pipeline_mode = #tpu.pipeline_mode<synchronous>, transform_indices = @transform_8, window_bounds = array<i64: 32, 1>}, {pipeline_mode = #tpu.pipeline_mode<synchronous>, transform_indices = @transform_9, window_bounds = array<i64: 32, 32>}, {pipeline_mode = #tpu.pipeline_mode<synchronous>, transform_indices = @transform_10, window_bounds = array<i64: 32, 1>}, {pipeline_mode = #tpu.pipeline_mode<synchronous>, transform_indices = @transform_11, window_bounds = array<i64: 32, 1>}, {pipeline_mode = #tpu.pipeline_mode<synchronous>, transform_indices = @transform_12, window_bounds = array<i64: 1, 1>}, {transform_indices = @transform_13, window_bounds = array<i64: 1, 128>}]} {
    %c0 = arith.constant 0 : index
    %c0_0 = arith.constant 0 : index
    %0 = vector.load %arg1[%c0, %c0_0] : memref<128x64xf32, #tpu.memory_space<vmem>>, vector<128x64xf32>
    %1 = arith.truncf %0 : vector<128x64xf32> to vector<128x64xbf16>
    %c0_1 = arith.constant 0 : index
    %c0_2 = arith.constant 0 : index
    %2 = vector.load %arg2[%c0_1, %c0_2] : memref<32x64xbf16, #tpu.memory_space<vmem>>, vector<32x64xbf16>
    %cst = arith.constant dense<0.000000e+00> : vector<32x128xf32>
    %3 = tpu.matmul %2, %1, %cst {dimension_numbers = #tpu.dot_dimension_numbers<[1], [1], [0], [0], [0, 0, 1, 0], [], []>} : vector<32x64xbf16>, vector<128x64xbf16>, vector<32x128xf32> -> vector<32x128xf32>
    %c0_3 = arith.constant 0 : index
    %c0_4 = arith.constant 0 : index
    %4 = vector.load %arg3[%c0_3, %c0_4] : memref<32x1xf32, #tpu.memory_space<vmem>>, vector<32x1xf32>
    %5 = vector.broadcast %4 : vector<32x1xf32> to vector<32x128xf32>
    %6 = arith.addf %3, %5 : vector<32x128xf32>
    %cst_5 = arith.constant 0.000000e+00 : f32
    %7 = vector.broadcast %cst_5 : f32 to vector<32x128xf32>
    %8 = arith.cmpf ogt, %6, %7 : vector<32x128xf32>
    %cst_6 = arith.constant 2.000000e-01 : f32
    %9 = vector.broadcast %cst_6 : f32 to vector<32x128xf32>
    %10 = arith.mulf %9, %6 : vector<32x128xf32>
    %11 = arith.select %8, %6, %10 : vector<32x128xi1>, vector<32x128xf32>
    %12 = arith.truncf %11 : vector<32x128xf32> to vector<32x128xbf16>
    %c0_7 = arith.constant 0 : index
    %c0_8 = arith.constant 0 : index
    %13 = vector.load %arg4[%c0_7, %c0_8] : memref<64x32xbf16, #tpu.memory_space<vmem>>, vector<64x32xbf16>
    %cst_9 = arith.constant dense<0.000000e+00> : vector<64x128xf32>
    %14 = tpu.matmul %13, %12, %cst_9 {dimension_numbers = #tpu.dot_dimension_numbers<[1], [0], [0], [1], [0, 0, 1, 1], [], []>} : vector<64x32xbf16>, vector<32x128xbf16>, vector<64x128xf32> -> vector<64x128xf32>
    %c0_10 = arith.constant 0 : index
    %c0_11 = arith.constant 0 : index
    %15 = vector.load %arg5[%c0_10, %c0_11] : memref<64x1xf32, #tpu.memory_space<vmem>>, vector<64x1xf32>
    %16 = vector.broadcast %15 : vector<64x1xf32> to vector<64x128xf32>
    %17 = arith.addf %14, %16 : vector<64x128xf32>
    %cst_12 = arith.constant 0.000000e+00 : f32
    %18 = vector.broadcast %cst_12 : f32 to vector<64x128xf32>
    %19 = arith.cmpf ogt, %17, %18 : vector<64x128xf32>
    %cst_13 = arith.constant 2.000000e-01 : f32
    %20 = vector.broadcast %cst_13 : f32 to vector<64x128xf32>
    %21 = arith.mulf %20, %17 : vector<64x128xf32>
    %22 = arith.select %19, %17, %21 : vector<64x128xi1>, vector<64x128xf32>
    %23 = arith.truncf %22 : vector<64x128xf32> to vector<64x128xbf16>
    %c0_14 = arith.constant 0 : index
    %c0_15 = arith.constant 0 : index
    %24 = vector.load %arg6[%c0_14, %c0_15] : memref<64x64xbf16, #tpu.memory_space<vmem>>, vector<64x64xbf16>
    %cst_16 = arith.constant dense<0.000000e+00> : vector<64x128xf32>
    %25 = tpu.matmul %24, %23, %cst_16 {dimension_numbers = #tpu.dot_dimension_numbers<[1], [0], [0], [1], [0, 0, 1, 1], [], []>} : vector<64x64xbf16>, vector<64x128xbf16>, vector<64x128xf32> -> vector<64x128xf32>
    %c0_17 = arith.constant 0 : index
    %c0_18 = arith.constant 0 : index
    %26 = vector.load %arg7[%c0_17, %c0_18] : memref<64x1xf32, #tpu.memory_space<vmem>>, vector<64x1xf32>
    %27 = vector.broadcast %26 : vector<64x1xf32> to vector<64x128xf32>
    %28 = arith.addf %25, %27 : vector<64x128xf32>
    %cst_19 = arith.constant 0.000000e+00 : f32
    %29 = vector.broadcast %cst_19 : f32 to vector<64x128xf32>
    %30 = arith.cmpf ogt, %28, %29 : vector<64x128xf32>
    %cst_20 = arith.constant 2.000000e-01 : f32
    %31 = vector.broadcast %cst_20 : f32 to vector<64x128xf32>
    %32 = arith.mulf %31, %28 : vector<64x128xf32>
    %33 = arith.select %30, %28, %32 : vector<64x128xi1>, vector<64x128xf32>
    %34 = arith.truncf %33 : vector<64x128xf32> to vector<64x128xbf16>
    %c0_21 = arith.constant 0 : index
    %c0_22 = arith.constant 0 : index
    %35 = vector.load %arg8[%c0_21, %c0_22] : memref<32x64xbf16, #tpu.memory_space<vmem>>, vector<32x64xbf16>
    %cst_23 = arith.constant dense<0.000000e+00> : vector<32x128xf32>
    %36 = tpu.matmul %35, %34, %cst_23 {dimension_numbers = #tpu.dot_dimension_numbers<[1], [0], [0], [1], [0, 0, 1, 1], [], []>} : vector<32x64xbf16>, vector<64x128xbf16>, vector<32x128xf32> -> vector<32x128xf32>
    %c0_24 = arith.constant 0 : index
    %c0_25 = arith.constant 0 : index
    %37 = vector.load %arg9[%c0_24, %c0_25] : memref<32x1xf32, #tpu.memory_space<vmem>>, vector<32x1xf32>
    %38 = vector.broadcast %37 : vector<32x1xf32> to vector<32x128xf32>
    %39 = arith.addf %36, %38 : vector<32x128xf32>
    %cst_26 = arith.constant 0.000000e+00 : f32
    %40 = vector.broadcast %cst_26 : f32 to vector<32x128xf32>
    %41 = arith.cmpf ogt, %39, %40 : vector<32x128xf32>
    %cst_27 = arith.constant 2.000000e-01 : f32
    %42 = vector.broadcast %cst_27 : f32 to vector<32x128xf32>
    %43 = arith.mulf %42, %39 : vector<32x128xf32>
    %44 = arith.select %41, %39, %43 : vector<32x128xi1>, vector<32x128xf32>
    %45 = arith.truncf %44 : vector<32x128xf32> to vector<32x128xbf16>
    %c0_28 = arith.constant 0 : index
    %c0_29 = arith.constant 0 : index
    %46 = vector.load %arg10[%c0_28, %c0_29] : memref<32x32xbf16, #tpu.memory_space<vmem>>, vector<32x32xbf16>
    %cst_30 = arith.constant dense<0.000000e+00> : vector<32x128xf32>
    %47 = tpu.matmul %46, %45, %cst_30 {dimension_numbers = #tpu.dot_dimension_numbers<[1], [0], [0], [1], [0, 0, 1, 1], [], []>} : vector<32x32xbf16>, vector<32x128xbf16>, vector<32x128xf32> -> vector<32x128xf32>
    %c0_31 = arith.constant 0 : index
    %c0_32 = arith.constant 0 : index
    %48 = vector.load %arg11[%c0_31, %c0_32] : memref<32x1xf32, #tpu.memory_space<vmem>>, vector<32x1xf32>
    %49 = vector.broadcast %48 : vector<32x1xf32> to vector<32x128xf32>
    %50 = arith.addf %47, %49 : vector<32x128xf32>
    %cst_33 = arith.constant 0.000000e+00 : f32
    %51 = vector.broadcast %cst_33 : f32 to vector<32x128xf32>
    %52 = arith.cmpf ogt, %50, %51 : vector<32x128xf32>
    %cst_34 = arith.constant 2.000000e-01 : f32
    %53 = vector.broadcast %cst_34 : f32 to vector<32x128xf32>
    %54 = arith.mulf %53, %50 : vector<32x128xf32>
    %55 = arith.select %52, %50, %54 : vector<32x128xi1>, vector<32x128xf32>
    %56 = arith.truncf %55 : vector<32x128xf32> to vector<32x128xbf16>
    %c0_35 = arith.constant 0 : index
    %c0_36 = arith.constant 0 : index
    %57 = vector.load %arg12[%c0_35, %c0_36] : memref<32x1xf32, #tpu.memory_space<vmem>>, vector<32x1xf32>
    %58 = arith.extf %56 : vector<32x128xbf16> to vector<32x128xf32>
    %59 = vector.broadcast %57 : vector<32x1xf32> to vector<32x128xf32>
    %60 = arith.mulf %59, %58 : vector<32x128xf32>
    %cst_37 = arith.constant dense<0.000000e+00> : vector<128xf32>
    %61 = vector.multi_reduction <add>, %60, %cst_37 [0] : vector<32x128xf32> to vector<128xf32>
    %62 = vector.shape_cast %61 : vector<128xf32> to vector<1x128xf32>
    %c0_38 = arith.constant 0 : index
    %c0_39 = arith.constant 0 : index
    %63 = vector.load %arg13[%c0_38, %c0_39] : memref<1x1xf32, #tpu.memory_space<vmem>>, vector<1x1xf32>
    %64 = vector.broadcast %63 : vector<1x1xf32> to vector<1x128xf32>
    %65 = arith.addf %62, %64 : vector<1x128xf32>
    %66 = arith.negf %65 : vector<1x128xf32>
    %67 = math.exp %66 : vector<1x128xf32>
    %cst_40 = arith.constant 1.000000e+00 : f32
    %68 = vector.broadcast %cst_40 : f32 to vector<1x128xf32>
    %69 = arith.addf %68, %67 : vector<1x128xf32>
    %70 = arith.divf %68, %69 : vector<1x128xf32>
    %c0_41 = arith.constant 0 : index
    %c0_42 = arith.constant 0 : index
    %71 = vector.load %arg14[%c0_41, %c0_42] : memref<1x128xf32, #tpu.memory_space<vmem>>, vector<1x128xf32>
    tpu.vector_store %arg14[%c0_41, %c0_42], %70 {strides = array<i32>} : memref<1x128xf32, #tpu.memory_space<vmem>>, vector<1x128xf32>,
    return
  }
  func.func @transform_0(%arg0: i32) -> (i32, i32) {
    %c0_i32 = arith.constant 0 : i32
    %c0_i32_0 = arith.constant 0 : i32
    return %arg0, %c0_i32 : i32, i32
  }
  func.func @transform_1(%arg0: i32) -> (i32, i32) {
    %c0_i32 = arith.constant 0 : i32
    %c0_i32_0 = arith.constant 0 : i32
    %c0_i32_1 = arith.constant 0 : i32
    return %c0_i32, %c0_i32_0 : i32, i32
  }
  func.func @transform_2(%arg0: i32) -> (i32, i32) {
    %c0_i32 = arith.constant 0 : i32
    %c0_i32_0 = arith.constant 0 : i32
    %c0_i32_1 = arith.constant 0 : i32
    return %c0_i32, %c0_i32_0 : i32, i32
  }
  func.func @transform_3(%arg0: i32) -> (i32, i32) {
    %c0_i32 = arith.constant 0 : i32
    %c0_i32_0 = arith.constant 0 : i32
    %c0_i32_1 = arith.constant 0 : i32
    return %c0_i32, %c0_i32_0 : i32, i32
  }
  func.func @transform_4(%arg0: i32) -> (i32, i32) {
    %c0_i32 = arith.constant 0 : i32
    %c0_i32_0 = arith.constant 0 : i32
    %c0_i32_1 = arith.constant 0 : i32
    return %c0_i32, %c0_i32_0 : i32, i32
  }
  func.func @transform_5(%arg0: i32) -> (i32, i32) {
    %c0_i32 = arith.constant 0 : i32
    %c0_i32_0 = arith.constant 0 : i32
    %c0_i32_1 = arith.constant 0 : i32
    return %c0_i32, %c0_i32_0 : i32, i32
  }
  func.func @transform_6(%arg0: i32) -> (i32, i32) {
    %c0_i32 = arith.constant 0 : i32
    %c0_i32_0 = arith.constant 0 : i32
    %c0_i32_1 = arith.constant 0 : i32
    return %c0_i32, %c0_i32_0 : i32, i32
  }
  func.func @transform_7(%arg0: i32) -> (i32, i32) {
    %c0_i32 = arith.constant 0 : i32
    %c0_i32_0 = arith.constant 0 : i32
    %c0_i32_1 = arith.constant 0 : i32
    return %c0_i32, %c0_i32_0 : i32, i32
  }
  func.func @transform_8(%arg0: i32) -> (i32, i32) {
    %c0_i32 = arith.constant 0 : i32
    %c0_i32_0 = arith.constant 0 : i32
    %c0_i32_1 = arith.constant 0 : i32
    return %c0_i32, %c0_i32_0 : i32, i32
  }
  func.func @transform_9(%arg0: i32) -> (i32, i32) {
    %c0_i32 = arith.constant 0 : i32
    %c0_i32_0 = arith.constant 0 : i32
    %c0_i32_1 = arith.constant 0 : i32
    return %c0_i32, %c0_i32_0 : i32, i32
  }
  func.func @transform_10(%arg0: i32) -> (i32, i32) {
    %c0_i32 = arith.constant 0 : i32
    %c0_i32_0 = arith.constant 0 : i32
    %c0_i32_1 = arith.constant 0 : i32
    return %c0_i32, %c0_i32_0 : i32, i32
  }
  func.func @transform_11(%arg0: i32) -> (i32, i32) {
    %c0_i32 = arith.constant 0 : i32
    %c0_i32_0 = arith.constant 0 : i32
    %c0_i32_1 = arith.constant 0 : i32
    return %c0_i32, %c0_i32_0 : i32, i32
  }
  func.func @transform_12(%arg0: i32) -> (i32, i32) {
    %c0_i32 = arith.constant 0 : i32
    %c0_i32_0 = arith.constant 0 : i32
    %c0_i32_1 = arith.constant 0 : i32
    return %c0_i32, %c0_i32_0 : i32, i32
  }
  func.func @transform_13(%arg0: i32) -> (i32, i32) {
    %c0_i32 = arith.constant 0 : i32
    %c0_i32_0 = arith.constant 0 : i32
    return %c0_i32, %arg0 : i32, i32
  }
}

</mosaic_0001>

<bundles_post_ra>
// kernel: tpu_custom_call.1
= control target key start
LH: loop header
LB: loop body
LE: loop exit
PB: predicated region body
PF: predicated region fallthrough
CT: control target
= control target key end

     0   :  { %s1935_s0 = inlined_call_operand.vmem [shape: f32[256,64], index: 0, kind: input, shape index: {}]   ;;  %s1936_s1 = inlined_call_operand.vmem [shape: bf16[32,64], index: 1, kind: input, shape index: {}]   ;;  %s1937_s2 = inlined_call_operand.vmem [shape: f32[32,1], index: 2, kind: input, shape index: {}]   ;;  %s1938_s3 = inlined_call_operand.vmem [shape: bf16[64,32], index: 3, kind: input, shape index: {}]   ;;  %s1939_s4 = inlined_call_operand.vmem [shape: f32[64,1], index: 4, kind: input, shape index: {}]   ;;  %s1940_s5 = inlined_call_operand.vmem [shape: bf16[64,64], index: 5, kind: input, shape index: {}]   ;;  %s1941_s6 = inlined_call_operand.vmem [shape: f32[64,1], index: 6, kind: input, shape index: {}]   ;;  %s1942_s7 = inlined_call_operand.vmem [shape: bf16[32,64], index: 7, kind: input, shape index: {}]   ;;  %s1943_s8 = inlined_call_operand.vmem [shape: f32[32,1], index: 8, kind: input, shape index: {}]   ;;  %s1944_s9 = inlined_call_operand.vmem [shape: bf16[32,32], index: 9, kind: input, shape index: {}]   ;;  %s1945_s10 = inlined_call_operand.vmem [shape: f32[32,1], index: 10, kind: input, shape index: {}]   ;;  %s1946_s11 = inlined_call_operand.vmem [shape: f32[32,1], index: 11, kind: input, shape index: {}]   ;;  %s1947_s12 = inlined_call_operand.<no memory space> [shape: f32[1,1], index: 12, kind: input, shape index: {}]   ;;  %s1948_s13 = inlined_call_operand.hbm [shape: f32[1,256], index: 13, kind: output, shape index: {}]  }
   0x1   :  { %v18_v0 = vstv %s1947_s12 }
   0x2   :  { %19 = vst [vmem:[#allocation2] sm:$0x1] %v18_v0 }
   0x3   :  { %20 = vsyncpa [#allocation4], 0 }
   0x4   :  { %22 = vsyncpa [#allocation4 + $0x1], 0  ;;  %s1650_s27 = smov 0   ;;  %s1652_s28 = smov 0  }
   0x5   :  { %s1654_s29 = smov 0   ;;  %s1656_s30 = smov 0  }
   0x6 LB: > { %1950 = sst [smem:[#allocation6_spill]] %s1569_s29  ;;  %s1302_s12 = sadd.s32 4294967295, %s1573_s30   ;;  %s1573_s30 = sphi %s1656_s30, %s1958_s30   ;;  %s1569_s29 = sphi %s1654_s29, %s1955_s29   ;;  %s1565_s28 = sphi %s1652_s28, %s1957_s28   ;;  %s1561_s27 = sphi %s1650_s27, %s1956_s27  }
   0x7   : > { %s1303_s14 = sadd.s32 4294967294, %s1573_s30   ;;  %s1673_s15 = sadd.s32 1, %s1573_s30  }
   0x8   : > { %s313_s16 = sadd.s32 1, %s1569_s29  ;;  %s310_s17 = ssub.s32 %s1573_s30, %s1673_s15 }
   0x9   : > { %p323_p0 = scmp.ne.s32.totalorder %s1569_s29, %s1565_s28  ;;  %p311_p1 = scmp.eq.s32.totalorder %s310_s17, 0 }
   0xa   : > { %p324_p2 = scmp.eq.s32.totalorder %s1302_s12, 1  ;;  %p329_p3 = scmp.ne.s32.totalorder %s1565_s28, %s1561_s27 }
   0xb   : > { %p330_p4 = scmp.eq.s32.totalorder %s1303_s14, 1  ;;  %p1306_p7 = scmp.ge.s32.totalorder %s1573_s30, 1 }
   0xc   : > { %s1683_s18 = scalar_select %p311_p1, %s1569_s29, %s313_s16  }
   0xd   : > { %p1685_p5 = por %p324_p2, %p323_p0  ;;  %p1689_p6 = por %p330_p4, %p329_p3 }
   0xe   : > { %1951 = sst [smem:[#allocation7_spill]] %s1683_s18  ;;  %p393_p8 = scmp.lt.s32.totalorder %s1573_s30, 3 }
  0x10   : > { %p394_p9 = pnand %p1306_p7, %p393_p8 }
  0x11   : > { %s1695_s21 = sshll.u32 (!%p394_p9), %s1302_s12, 4  ;;  %v1493_v1 = vld [vmem:[%s1936_s1] sm:$0xff] (!%p394_p9)   ;;  %vm505_vm0 = vcmask (!%p394_p9), 523264   ;;  %v1575_v3 = vmov (!%p394_p9), 0   ;;  %v473_v4 = vld [vmem:[%s1937_s2 + $0x10] sm:$0xff] (!%p394_p9)  ;;  %v472_v5 = vld [vmem:[%s1937_s2 + $0x8] sm:$0xff] (!%p394_p9) }
  0x12   : > { %397 = sbr.rel (%p394_p9) target bundleno = 1318 (0x526), region = 72  ;;  %p437_p10 = scmp.lt.s32.totalorder (!%p394_p9), %s1695_s21, 31  ;;  %v471_v2 = vld [vmem:[%s1937_s2] sm:$0xff] (!%p394_p9)  ;;  %1391 = vmatprep.mubr.msk.bf16.mxu0 (!%p394_p9), %vm505_vm0, %v1493_v1  ;;  %1491 = vset.pattern.permute.xlu0 (!%p394_p9), %v1575_v3  ;;  %v474_v6 = vld [vmem:[%s1937_s2 + $0x18] sm:$0xff] (!%p394_p9)  ;;  %v608_v15 = vld [vmem:[%s1939_s4 + $0x8] sm:$0xff] (!%p394_p9)  ;;  %vm675_vm1 = vcmask (!%p394_p9), 261120  }
  0x13   : > { %477 = vperm.xlu0 (!%p394_p9), %1491, %v471_v2   ;;  %1492 = vset.pattern.permute.xlu1 (!%p394_p9), %v1575_v3  ;;  %v607_v13 = vld [vmem:[%s1939_s4] sm:$0xff] (!%p394_p9)  ;;  %v609_v18 = vld [vmem:[%s1939_s4 + $0x10] sm:$0xff] (!%p394_p9)  ;;  %v610_v20 = vld [vmem:[%s1939_s4 + $0x18] sm:$0xff] (!%p394_p9)  ;;  %s434_s24 = sand.u32 (!%p394_p9), 1, %s1565_s28   ;;  %s1893_s18 = scalar_lea.hbm (!%p394_p9), %s1948_s13, %s1695_s21 }
  0x14   : > { %487 = vperm.xlu1 (!%p394_p9), %1492, %v473_v4   ;;  %v611_v22 = vld [vmem:[%s1939_s4 + $0x20] sm:$0xff] (!%p394_p9)  ;;  %v612_v24 = vld [vmem:[%s1939_s4 + $0x28] sm:$0xff] (!%p394_p9)  ;;  %v613_v27 = vld [vmem:[%s1939_s4 + $0x30] sm:$0xff] (!%p394_p9)  ;;  %s1236_s12 = scalar_lea.sflag (!%p394_p9), [#allocation4], %s434_s24  ;;  %s1576_s17 = smov (!%p394_p9), [#allocation3]  }
  0x15   : > { %v614_v28 = vld [vmem:[%s1939_s4 + $0x38] sm:$0xff] (!%p394_p9)  ;;  %v789_v29 = vld [vmem:[%s1941_s6] sm:$0xff] (!%p394_p9)  ;;  %v790_v31 = vld [vmem:[%s1941_s6 + $0x8] sm:$0xff] (!%p394_p9)  ;;  %s1515_s22 = sshll.u32 (!%p394_p9), %s1576_s17, 4  ;;  %s1516_s22 = int_to_ptr.vmem [resolvable:$false] %s1515_s22 }
  0x16   : > { %v791_v34 = vld [vmem:[%s1941_s6 + $0x10] sm:$0xff] (!%p394_p9)  ;;  %v792_v35 = vld [vmem:[%s1941_s6 + $0x18] sm:$0xff] (!%p394_p9)  ;;  %v793_v38 = vld [vmem:[%s1941_s6 + $0x20] sm:$0xff] (!%p394_p9)  ;;  %s1517_s23 = scalar_lea.vmem (!%p394_p9), %s1516_s22, 32 }
  0x17   : > { %482 = vperm.xlu0 (!%p394_p9), %1491, %v472_v5   ;;  %v794_v39 = vld [vmem:[%s1941_s6 + $0x28] sm:$0xff] (!%p394_p9)  ;;  %v795_v42 = vld [vmem:[%s1941_s6 + $0x30] sm:$0xff] (!%p394_p9)  ;;  %v796_v43 = vld [vmem:[%s1941_s6 + $0x38] sm:$0xff] (!%p394_p9) }
  0x18   : > { %492 = vperm.xlu1 (!%p394_p9), %1492, %v474_v6   ;;  %v966_v46 = vld [vmem:[%s1943_s8] sm:$0xff] (!%p394_p9)  ;;  %v967_v47 = vld [vmem:[%s1943_s8 + $0x8] sm:$0xff] (!%p394_p9)  ;;  %v968_v50 = vld [vmem:[%s1943_s8 + $0x10] sm:$0xff] (!%p394_p9) }
  0x19   : > { %s438_s26 = scalar_select %p437_p10, %s1695_s21, 31  ;;  %v969_v51 = vld [vmem:[%s1943_s8 + $0x18] sm:$0xff]  ;;  %v1073_v54 = vld [vmem:[%s1945_s10] sm:$0xff]  ;;  %v1074_v55 = vld [vmem:[%s1945_s10 + $0x8] sm:$0xff] }
  0x1a   : > { %v1075_v58 = vld [vmem:[%s1945_s10 + $0x10] sm:$0xff]  ;;  %v1076_v59 = vld [vmem:[%s1945_s10 + $0x18] sm:$0xff]  ;;  %v1176_v62 = vld [vmem:[%s1946_s11] sm:$0xff] }
  0x1b   : > { %s1308_s16 = sshll.u32 %s438_s26, 3  ;;  %617 = vperm.xlu0 %1491, %v607_v13   ;;  %v1177_v63 = vld [vmem:[%s1946_s11 + $0x8] sm:$0xff]  ;;  %v1178_v0 = vld [vmem:[%s1946_s11 + $0x10] sm:$0xff]  ;;  %v1179_v1 = vld [vmem:[%s1946_s11 + $0x18] sm:$0xff]  ;;  %s435_s26 = scalar_lea.vmem [#allocation3], %s434_s24 }
  0x1c   : > { %s1715_s25 = scalar_lea.vmem %s1935_s0, %s1308_s16  ;;  %622 = vperm.xlu1 %1492, %v608_v15   ;;  %v1217_v3 = vld [vmem:[#allocation2] sm:$0x1]  ;;  %v1494_v4 = vld [vmem:[%s1936_s1 + $0x8] sm:$0xff]  }
  0x1d   : > { %v443_v7 = vld [vmem:[%s1715_s25] sm:$0xff]  ;;  %v444_v8 = vld [vmem:[%s1715_s25 + $0x8] sm:$0xff]  ;;  %v445_v9 = vld [vmem:[%s1715_s25 + $0x10] sm:$0xff] }
  0x1e   : > { %v459_v10 = vpack.c.bf16 %v444_v8, %v443_v7  ;;  %v446_v11 = vld [vmem:[%s1715_s25 + $0x18] sm:$0xff]  ;;  %v447_v16 = vld [vmem:[%s1715_s25 + $0x20] sm:$0xff]  ;;  %v448_v17 = vld [vmem:[%s1715_s25 + $0x28] sm:$0xff] }
  0x1f   : > { %v460_v12 = vpack.c.bf16 %v446_v11, %v445_v9  ;;  %v461_v19 = vpack.c.bf16 %v448_v17, %v447_v16  ;;  %627 = vperm.xlu0 %1491, %v609_v18   ;;  %v449_v25 = vld [vmem:[%s1715_s25 + $0x30] sm:$0xff]  ;;  %v450_v26 = vld [vmem:[%s1715_s25 + $0x38] sm:$0xff]  ;;  %v451_v32 = vld [vmem:[%s1715_s25 + $0x40] sm:$0xff] }
  0x20   : > { %1443 = vmatprep.subr.msk.bf16.mxu0 %vm505_vm0, %v459_v10  ;;  %v513_v14 = vsel %vm505_vm0, %v459_v10, 0  ;;  %632 = vperm.xlu1 %1492, %v610_v20   ;;  %v462_v30 = vpack.c.bf16 %v450_v26, %v449_v25  ;;  %v452_v33 = vld [vmem:[%s1715_s25 + $0x48] sm:$0xff]  ;;  %v453_v40 = vld [vmem:[%s1715_s25 + $0x50] sm:$0xff]  ;;  %v454_v41 = vld [vmem:[%s1715_s25 + $0x58] sm:$0xff] }
  0x21   : > { %1376 = vmatpush3.bf16.xpose.msra.mxu0 %v513_v14  ;;  %v516_v21 = vsel %vm505_vm0, %v460_v12, 0  ;;  %v519_v23 = vsel %vm505_vm0, %v461_v19, 0  ;;  %v463_v37 = vpack.c.bf16 %v452_v33, %v451_v32  ;;  %v464_v45 = vpack.c.bf16 %v454_v41, %v453_v40  ;;  %v455_v48 = vld [vmem:[%s1715_s25 + $0x60] sm:$0xff]  ;;  %v456_v49 = vld [vmem:[%s1715_s25 + $0x68] sm:$0xff]  ;;  %v457_v56 = vld [vmem:[%s1715_s25 + $0x70] sm:$0xff] }
  0x22   : > { %1444 = vmatprep.subr.msk.bf16.mxu0 %vm505_vm0, %v460_v12  ;;  %v522_v36 = vsel %vm505_vm0, %v462_v30, 0  ;;  %v465_v53 = vpack.c.bf16 %v456_v49, %v455_v48  ;;  %v458_v57 = vld [vmem:[%s1715_s25 + $0x78] sm:$0xff]  ;;  %v1495_v5 = vld [vmem:[%s1938_s3] sm:$0xff]   ;;  %s1248_s25 = sshll.u32 %s435_s26, 4  ;;  %s1895_s25 = int_to_ptr.vmem [resolvable:$true] %s1248_s25 }
  0x23   : > { %637 = vperm.xlu0 %1491, %v611_v22   ;;  %v525_v44 = vsel %vm505_vm0, %v463_v37, 0  ;;  %v528_v52 = vsel %vm505_vm0, %v464_v45, 0  ;;  %v466_v61 = vpack.c.bf16 %v458_v57, %v457_v56  ;;  %1399 = vmatprep.mubr.msk.bf16.mxu1 %vm675_vm1, %v1495_v5  ;;  %s1511_s16 = scalar_lea.vmem %s1895_s25, 16  ;;  %p1518_p0 = scmp.lt.s32.totalorder %s1895_s25, %s1516_s22 }
  0x24   : > { %642 = vperm.xlu1 %1492, %v612_v24   ;;  %v531_v60 = vsel %vm505_vm0, %v465_v53, 0  ;;  %p1512_p11 = scmp.ne.s32.totalorder %s1895_s25, %s1511_s16  ;;  %p1519_p1 = scmp.lt.s32.totalorder %s1517_s23, %s1511_s16 }
  0x25   : > { %v534_v2 = vsel %vm505_vm0, %v466_v61, 0 }
  0x26   : > { %p1513_p12 = pnand %p1512_p11, %p1685_p5  ;;  %p1520_p2 = por %p1519_p1, %p1518_p0 }
  0x27   : > { %647 = vperm.xlu0 %1491, %v613_v27  }
  0x28   : > { %652 = vperm.xlu1 %1492, %v614_v28   ;;  %v1496_v28 = vld [vmem:[%s1938_s3 + $0x8] sm:$0xff]   ;;  %p1514_p13 = pneg %p1513_p12 }
  0x29   : > { %1378 = vmatpush3.bf16.xpose.msra.mxu0 %v516_v21 }
  0x2a   : > { %1445 = vmatprep.subr.msk.bf16.mxu0 %vm505_vm0, %v461_v19  ;;  %p1521_p3 = pnand %p1520_p2, %p1514_p13 }
  0x2b   : > { %799 = vperm.xlu0 %1491, %v789_v29   ;;  %v1497_v29 = vld [vmem:[%s1938_s3 + $0x10] sm:$0xff]  }
  0x2c   : > { %804 = vperm.xlu1 %1492, %v790_v31   ;;  %v1499_v31 = vld [vmem:[%s1940_s5] sm:$0xff]  }
  0x2f   : > { %809 = vperm.xlu0 %1491, %v791_v34  }
  0x30   : > { %814 = vperm.xlu1 %1492, %v792_v35  }
  0x31   : > { %1380 = vmatpush3.bf16.xpose.msra.mxu0 %v519_v23 }
  0x32   : > { %1446 = vmatprep.subr.msk.bf16.mxu0 %vm505_vm0, %v462_v30  ;;  %v1498_v30 = vld [vmem:[%s1938_s3 + $0x18] sm:$0xff]  }
  0x33   : > { %819 = vperm.xlu0 %1491, %v793_v38  }
  0x34   : > { %824 = vperm.xlu1 %1492, %v794_v39  }
  0x37   : > { %829 = vperm.xlu0 %1491, %v795_v42  }
  0x38   : > { %834 = vperm.xlu1 %1492, %v796_v43  }
  0x39   : > { %1382 = vmatpush3.bf16.xpose.msra.mxu0 %v522_v36 }
  0x3a   : > { %1447 = vmatprep.subr.msk.bf16.mxu0 %vm505_vm0, %v463_v37 }
  0x3b   : > { %972 = vperm.xlu0 %1491, %v966_v46  }
  0x3c   : > { %977 = vperm.xlu1 %1492, %v967_v47  }
  0x3f   : > { %982 = vperm.xlu0 %1491, %v968_v50  }
  0x40   : > { %987 = vperm.xlu1 %1492, %v969_v51  }
  0x41   : > { %1384 = vmatpush3.bf16.xpose.msra.mxu0 %v525_v44 }
  0x42   : > { %1448 = vmatprep.subr.msk.bf16.mxu0 %vm505_vm0, %v464_v45 }
  0x43   : > { %1079 = vperm.xlu0 %1491, %v1073_v54  }
  0x44   : > { %1084 = vperm.xlu1 %1492, %v1074_v55  }
  0x47   : > { %1089 = vperm.xlu0 %1491, %v1075_v58  }
  0x48   : > { %1094 = vperm.xlu1 %1492, %v1076_v59  }
  0x49   : > { %1386 = vmatpush3.bf16.xpose.msra.mxu0 %v528_v52 }
  0x4a   : > { %1449 = vmatprep.subr.msk.bf16.mxu0 %vm505_vm0, %v465_v53 }
  0x4b   : > { %1186 = vperm.xlu0 %1491, %v1176_v62  }
  0x4c   : > { %1191 = vperm.xlu1 %1492, %v1177_v63  }
  0x4f   : > { %1196 = vperm.xlu0 %1491, %v1178_v0  }
  0x50   : > { %1201 = vperm.xlu1 %1492, %v1179_v1  }
  0x51   : > { %1388 = vmatpush3.bf16.xpose.msra.mxu0 %v531_v60 }
  0x52   : > { %1450 = vmatprep.subr.msk.bf16.mxu0 %vm505_vm0, %v466_v61 }
  0x53   : > { %1220 = vperm.xlu0 %1491, %v1217_v3  }
  0x59   : > { %1390 = vmatpush3.bf16.xpose.msra.mxu0 %v534_v2 }
  0x60   : > { %1392 = vmatmul.mubr.msk.bf16.vlgmr.msra.gmra.mrb[0].mxu0 %vm505_vm0, %v1494_v4 }
  0x92   : > { %v478_v7 = vpop.permute.xlu0 %477 }
  0x93   : > { %v488_v6 = vpop.permute.xlu1 %487 }
  0x96   : > { %v483_v14 = vpop.permute.xlu0 %482 }
  0x97   : > { %v493_v11 = vpop.permute.xlu1 %492 }
  0x9a   : > { %v618_v32 = vpop.permute.xlu0 %617 }
  0x9b   : > { %v623_v33 = vpop.permute.xlu1 %622 }
  0x9e   : > { %v628_v34 = vpop.permute.xlu0 %627 }
  0x9f   : > { %v633_v35 = vpop.permute.xlu1 %632 }
  0xa2   : > { %v638_v39 = vpop.permute.xlu0 %637 }
  0xa3   : > { %v643_v45 = vpop.permute.xlu1 %642 }
  0xa6   : > { %v648_v52 = vpop.permute.xlu0 %647 }
  0xa7   : > { %v653_v60 = vpop.permute.xlu1 %652 }
 0x133   : > { %v1393_v8 = vpop.f32.mrb[0].mxu0 }
 0x134   : > { %v579_v9 = vadd.f32 %v1393_v8, %v488_v6  ;;  %v570_v10 = vpop.f32.mrb[1].mxu0 }
 0x135   : > { %v571_v12 = vadd.f32 %v570_v10, %v478_v7  ;;  %v1394_v13 = vpop.f32.mrb[2].mxu0 }
 0x136   : > { %v591_v15 = vmul.f32 0.2, %v579_v9  ;;  %v582_v16 = vadd.f32 %v1394_v13, %v493_v11  ;;  %v573_v17 = vpop.f32.mrb[3].mxu0  ;;  %vm587_vm2 = vcmp.gt.f32.partialorder %v579_v9, 0.0  ;;  %v1501_v13 = vld [vmem:[%s1940_s5 + $0x10] sm:$0xff]  }
 0x137   : > { %v589_v18 = vmul.f32 0.2, %v571_v12  ;;  %v574_v19 = vadd.f32 %v573_v17, %v483_v14  ;;  %vm585_vm4 = vcmp.gt.f32.partialorder %v571_v12, 0.0  ;;  %v1502_v14 = vld [vmem:[%s1940_s5 + $0x18] sm:$0xff]   ;;  %v805_v17 = vpop.permute.xlu1 %804 }
 0x138   : > { %vm588_vm3 = vcmp.gt.f32.partialorder %v582_v16, 0.0  ;;  %v592_v20 = vmul.f32 0.2, %v582_v16  ;;  %v595_v22 = vsel %vm587_vm2, %v579_v9, %v591_v15  ;;  %v1503_v15 = vld [vmem:[%s1942_s7] sm:$0xff]  }
 0x139   : > { %v590_v21 = vmul.f32 0.2, %v574_v19  ;;  %vm586_vm5 = vcmp.gt.f32.partialorder %v574_v19, 0.0  ;;  %v593_v24 = vsel %vm585_vm4, %v571_v12, %v589_v18  ;;  %v1500_v12 = vld [vmem:[%s1940_s5 + $0x8] sm:$0xff]  }
 0x13a   : > { %v596_v23 = vsel %vm588_vm3, %v582_v16, %v592_v20  ;;  %v800_v16 = vpop.permute.xlu0 %799 }
 0x13b   : > { %v594_v25 = vsel %vm586_vm5, %v574_v19, %v590_v21  ;;  %v598_v26 = vpack.c.bf16 %v596_v23, %v595_v22  ;;  %v815_v19 = vpop.permute.xlu1 %814 }
 0x13c   : > { %v597_v27 = vpack.c.bf16 %v594_v25, %v593_v24 }
 0x13e   : > { %1395 = vmatprep.subr.bf16.mxu1 %v597_v27  ;;  %v810_v18 = vpop.permute.xlu0 %809 }
 0x13f   : > { %1396 = vmatpush3.bf16.msra.mxu1 %v597_v27 }
 0x140   : > { %1397 = vmatprep.subr.bf16.mxu1 %v598_v26 }
 0x142   : > { %v820_v23 = vpop.permute.xlu0 %819 }
 0x143   : > { %1398 = vmatpush3.bf16.msra.mxu1 %v598_v26 }
 0x146   : > { %1400 = vmatmul.mubr.msk.bf16.vlgmr.msra.gmra.mrb[0].mxu1 %vm675_vm1, %v1496_v28 }
 0x147   : > { %1403 = vmatprep.mubr.msk.bf16.mxu1 %vm675_vm1, %v1497_v29  ;;  %v825_v29 = vpop.permute.xlu1 %824 }
 0x14e   : > { %1404 = vmatmul.mubr.msk.bf16.gmra.mrb[4].mxu1 %vm675_vm1, %v1498_v30 }
 0x14f   : > { %1415 = vmatprep.mubr.msk.bf16.mxu1 %vm505_vm0, %v1499_v31 }
 0x219   : > { %v1401_v36 = vpop.f32.mrb[0].mxu1 }
 0x21a   : > { %v731_v37 = vadd.f32 %v1401_v36, %v628_v34  ;;  %v722_v38 = vpop.f32.mrb[1].mxu1  ;;  %v830_v36 = vpop.permute.xlu0 %829 }
 0x21b   : > { %v723_v40 = vadd.f32 %v722_v38, %v618_v32  ;;  %v1402_v41 = vpop.f32.mrb[2].mxu1 }
 0x21c   : > { %v763_v42 = vmul.f32 0.2, %v731_v37  ;;  %v734_v43 = vadd.f32 %v1402_v41, %v633_v35  ;;  %v725_v44 = vpop.f32.mrb[3].mxu1  ;;  %vm755_vm6 = vcmp.gt.f32.partialorder %v731_v37, 0.0 }
 0x21d   : > { %v761_v46 = vmul.f32 0.2, %v723_v40  ;;  %v726_v47 = vadd.f32 %v725_v44, %v623_v33  ;;  %vm753_vm7 = vcmp.gt.f32.partialorder %v723_v40, 0.0  ;;  %v835_v44 = vpop.permute.xlu1 %834 }
 0x21e   : > { %vm756_vm8 = vcmp.gt.f32.partialorder %v734_v43, 0.0  ;;  %v764_v48 = vmul.f32 0.2, %v734_v43  ;;  %v771_v50 = vsel %vm755_vm6, %v731_v37, %v763_v42 }
 0x21f   : > { %vm754_vm9 = vcmp.gt.f32.partialorder %v726_v47, 0.0  ;;  %v762_v49 = vmul.f32 0.2, %v726_v47  ;;  %v769_v54 = vsel %vm753_vm7, %v723_v40, %v761_v46 }
 0x220   : > { %v772_v51 = vsel %vm756_vm8, %v734_v43, %v764_v48 }
 0x221   : > { %v1405_v53 = vpop.f32.mrb[4].mxu1  ;;  %v770_v55 = vsel %vm754_vm9, %v726_v47, %v762_v49  ;;  %v778_v56 = vpack.c.bf16 %v772_v51, %v771_v50 }
 0x222   : > { %v747_v57 = vadd.f32 %v1405_v53, %v648_v52  ;;  %v738_v58 = vpop.f32.mrb[5].mxu1  ;;  %v777_v59 = vpack.c.bf16 %v770_v55, %v769_v54 }
 0x223   : > { %v739_v61 = vadd.f32 %v738_v58, %v638_v39  ;;  %v1406_v62 = vpop.f32.mrb[6].mxu1 }
 0x224   : > { %v767_v63 = vmul.f32 0.2, %v747_v57  ;;  %v750_v0 = vadd.f32 %v1406_v62, %v653_v60  ;;  %v741_v1 = vpop.f32.mrb[7].mxu1  ;;  %1407 = vmatprep.subr.bf16.mxu1 %v777_v59  ;;  %vm759_vm10 = vcmp.gt.f32.partialorder %v747_v57, 0.0  ;;  %v1504_v60 = vld [vmem:[%s1942_s7 + $0x8] sm:$0xff]   ;;  %v973_v62 = vpop.permute.xlu0 %972 }
 0x225   : > { %v765_v2 = vmul.f32 0.2, %v739_v61  ;;  %v742_v3 = vadd.f32 %v741_v1, %v643_v45  ;;  %1408 = vmatpush3.bf16.msra.mxu1 %v777_v59  ;;  %vm757_vm11 = vcmp.gt.f32.partialorder %v739_v61, 0.0 }
 0x226   : > { %vm760_vm12 = vcmp.gt.f32.partialorder %v750_v0, 0.0  ;;  %v768_v4 = vmul.f32 0.2, %v750_v0  ;;  %1409 = vmatprep.subr.bf16.mxu1 %v778_v56  ;;  %v775_v6 = vsel %vm759_vm10, %v747_v57, %v767_v63  ;;  %v978_v63 = vpop.permute.xlu1 %977 }
 0x227   : > { %vm758_vm13 = vcmp.gt.f32.partialorder %v742_v3, 0.0  ;;  %v766_v5 = vmul.f32 0.2, %v742_v3  ;;  %v773_v8 = vsel %vm757_vm11, %v739_v61, %v765_v2  ;;  %v1505_v61 = vld [vmem:[%s1944_s9] sm:$0xff]  }
 0x228   : > { %v776_v7 = vsel %vm760_vm12, %v750_v0, %v768_v4  ;;  %v983_v0 = vpop.permute.xlu0 %982 }
 0x229   : > { %1410 = vmatpush3.bf16.msra.mxu1 %v778_v56  ;;  %v774_v9 = vsel %vm758_vm13, %v742_v3, %v766_v5  ;;  %v780_v10 = vpack.c.bf16 %v776_v7, %v775_v6 }
 0x22a   : > { %v779_v11 = vpack.c.bf16 %v774_v9, %v773_v8  ;;  %v988_v4 = vpop.permute.xlu1 %987 }
 0x22c   : > { %1411 = vmatprep.subr.bf16.mxu1 %v779_v11 }
 0x22d   : > { %1412 = vmatpush3.bf16.msra.mxu1 %v779_v11 }
 0x22e   : > { %1413 = vmatprep.subr.bf16.mxu1 %v780_v10 }
 0x231   : > { %1414 = vmatpush3.bf16.msra.mxu1 %v780_v10 }
 0x234   : > { %1416 = vmatmul.mubr.msk.bf16.vlgmr.msra.gmra.mrb[8].mxu1 %vm505_vm0, %v1500_v12 }
 0x235   : > { %1419 = vmatprep.mubr.msk.bf16.mxu1 %vm505_vm0, %v1501_v13 }
 0x23c   : > { %1420 = vmatmul.mubr.msk.bf16.gmra.mrb[12].mxu1 %vm505_vm0, %v1502_v14 }
 0x23d   : > { %1431 = vmatprep.mubr.msk.bf16.mxu1 %vm505_vm0, %v1503_v15 }
 0x307   : > { %v1417_v20 = vpop.f32.mrb[8].mxu1 }
 0x308   : > { %v912_v21 = vadd.f32 %v1417_v20, %v810_v18  ;;  %v903_v22 = vpop.f32.mrb[9].mxu1  ;;  %v1506_v20 = vld [vmem:[%s1944_s9 + $0x8] sm:$0xff]  }
 0x309   : > { %v904_v24 = vadd.f32 %v903_v22, %v800_v16  ;;  %v1418_v25 = vpop.f32.mrb[10].mxu1  ;;  %v1085_v22 = vpop.permute.xlu1 %1084 }
 0x30a   : > { %v944_v26 = vmul.f32 0.2, %v912_v21  ;;  %v915_v27 = vadd.f32 %v1418_v25, %v815_v19  ;;  %v906_v28 = vpop.f32.mrb[11].mxu1  ;;  %vm936_vm14 = vcmp.gt.f32.partialorder %v912_v21, 0.0 }
 0x30b   : > { %v942_v30 = vmul.f32 0.2, %v904_v24  ;;  %v907_v31 = vadd.f32 %v906_v28, %v805_v17  ;;  %vm934_vm15 = vcmp.gt.f32.partialorder %v904_v24, 0.0 }
 0x30c   : > { %vm937_vm2 = vcmp.gt.f32.partialorder %v915_v27, 0.0  ;;  %v945_v32 = vmul.f32 0.2, %v915_v27  ;;  %v952_v34 = vsel %vm936_vm14, %v912_v21, %v944_v26  ;;  %v1080_v21 = vpop.permute.xlu0 %1079 }
 0x30d   : > { %vm935_vm3 = vcmp.gt.f32.partialorder %v907_v31, 0.0  ;;  %v943_v33 = vmul.f32 0.2, %v907_v31  ;;  %v950_v38 = vsel %vm934_vm15, %v904_v24, %v942_v30 }
 0x30e   : > { %v953_v35 = vsel %vm937_vm2, %v915_v27, %v945_v32  ;;  %v1095_v27 = vpop.permute.xlu1 %1094 }
 0x30f   : > { %v1421_v37 = vpop.f32.mrb[12].mxu1  ;;  %v951_v39 = vsel %vm935_vm3, %v907_v31, %v943_v33  ;;  %v959_v40 = vpack.c.bf16 %v953_v35, %v952_v34 }
 0x310   : > { %v928_v41 = vadd.f32 %v1421_v37, %v830_v36  ;;  %v919_v42 = vpop.f32.mrb[13].mxu1  ;;  %v958_v43 = vpack.c.bf16 %v951_v39, %v950_v38 }
 0x311   : > { %v920_v45 = vadd.f32 %v919_v42, %v820_v23  ;;  %v1422_v46 = vpop.f32.mrb[14].mxu1  ;;  %v1090_v23 = vpop.permute.xlu0 %1089 }
 0x312   : > { %v948_v47 = vmul.f32 0.2, %v928_v41  ;;  %v931_v48 = vadd.f32 %v1422_v46, %v835_v44  ;;  %v922_v49 = vpop.f32.mrb[15].mxu1  ;;  %1423 = vmatprep.subr.bf16.mxu1 %v958_v43  ;;  %vm940_vm4 = vcmp.gt.f32.partialorder %v928_v41, 0.0  ;;  %v1192_v44 = vpop.permute.xlu1 %1191 }
 0x313   : > { %v946_v50 = vmul.f32 0.2, %v920_v45  ;;  %v923_v51 = vadd.f32 %v922_v49, %v825_v29  ;;  %1424 = vmatpush3.bf16.msra.mxu1 %v958_v43  ;;  %vm938_vm5 = vcmp.gt.f32.partialorder %v920_v45, 0.0 }
 0x314   : > { %vm941_vm6 = vcmp.gt.f32.partialorder %v931_v48, 0.0  ;;  %v949_v52 = vmul.f32 0.2, %v931_v48  ;;  %1425 = vmatprep.subr.bf16.mxu1 %v959_v40  ;;  %v956_v54 = vsel %vm940_vm4, %v928_v41, %v948_v47 }
 0x315   : > { %vm939_vm7 = vcmp.gt.f32.partialorder %v923_v51, 0.0  ;;  %v947_v53 = vmul.f32 0.2, %v923_v51  ;;  %v954_v56 = vsel %vm938_vm5, %v920_v45, %v946_v50  ;;  %v1187_v39 = vpop.permute.xlu0 %1186 }
 0x316   : > { %v957_v55 = vsel %vm941_vm6, %v931_v48, %v949_v52 }
 0x317   : > { %1426 = vmatpush3.bf16.msra.mxu1 %v959_v40  ;;  %v955_v57 = vsel %vm939_vm7, %v923_v51, %v947_v53  ;;  %v961_v58 = vpack.c.bf16 %v957_v55, %v956_v54  ;;  %v1202_v54 = vpop.permute.xlu1 %1201 }
 0x318   : > { %v960_v59 = vpack.c.bf16 %v955_v57, %v954_v56  ;;  %v1223_v57 = vlaneseq }
 0x319   : > { %v1197_v51 = vpop.permute.xlu0 %1196 }
 0x31a   : > { %1427 = vmatprep.subr.bf16.mxu1 %v960_v59 }
 0x31b   : > { %1428 = vmatpush3.bf16.msra.mxu1 %v960_v59 }
 0x31c   : > { %1429 = vmatprep.subr.bf16.mxu1 %v961_v58 }
 0x31f   : > { %1430 = vmatpush3.bf16.msra.mxu1 %v961_v58 }
 0x322   : > { %1432 = vmatmul.mubr.msk.bf16.vlgmr.msra.gmra.mrb[16].mxu1 %vm505_vm0, %v1504_v60  ;;  %v1224_v60 = vshrl.u32 %v1223_v57, 7 }
 0x323   : > { %1439 = vmatprep.mubr.msk.bf16.mxu1 %vm675_vm1, %v1505_v61 }
 0x3f5   : > { %v1433_v1 = vpop.f32.mrb[16].mxu1 }
 0x3f6   : > { %v1049_v2 = vadd.f32 %v1433_v1, %v983_v0  ;;  %v1040_v3 = vpop.f32.mrb[17].mxu1  ;;  %v1221_v1 = vpop.permute.xlu0 %1220 }
 0x3f7   : > { %v1041_v5 = vadd.f32 %v1040_v3, %v973_v62  ;;  %v1434_v6 = vpop.f32.mrb[18].mxu1 }
 0x3f8   : > { %v1061_v7 = vmul.f32 0.2, %v1049_v2  ;;  %v1052_v8 = vadd.f32 %v1434_v6, %v988_v4  ;;  %v1043_v9 = vpop.f32.mrb[19].mxu1  ;;  %vm1057_vm8 = vcmp.gt.f32.partialorder %v1049_v2, 0.0 }
 0x3f9   : > { %v1059_v10 = vmul.f32 0.2, %v1041_v5  ;;  %v1044_v11 = vadd.f32 %v1043_v9, %v978_v63  ;;  %vm1055_vm0 = vcmp.gt.f32.partialorder %v1041_v5, 0.0  ;;  %v1225_v63 = vsub.s32 0, %v1224_v60 }
 0x3fa   : > { %vm1058_vm9 = vcmp.gt.f32.partialorder %v1052_v8, 0.0  ;;  %v1062_v12 = vmul.f32 0.2, %v1052_v8  ;;  %v1065_v14 = vsel %vm1057_vm8, %v1049_v2, %v1061_v7 }
 0x3fb   : > { %vm1056_vm10 = vcmp.gt.f32.partialorder %v1044_v11, 0.0  ;;  %v1060_v13 = vmul.f32 0.2, %v1044_v11  ;;  %v1063_v16 = vsel %vm1055_vm0, %v1041_v5, %v1059_v10  ;;  %v1226_v3 = vrot.slane %v1221_v1, %v1225_v63 }
 0x3fc   : > { %v1066_v15 = vsel %vm1058_vm9, %v1052_v8, %v1062_v12 }
 0x3fd   : > { %v1064_v17 = vsel %vm1056_vm10, %v1044_v11, %v1060_v13  ;;  %v1068_v18 = vpack.c.bf16 %v1066_v15, %v1065_v14 }
 0x3fe   : > { %v1067_v19 = vpack.c.bf16 %v1064_v17, %v1063_v16 }
 0x400   : > { %1435 = vmatprep.subr.bf16.mxu1 %v1067_v19 }
 0x401   : > { %1436 = vmatpush3.bf16.msra.mxu1 %v1067_v19 }
 0x402   : > { %1437 = vmatprep.subr.bf16.mxu1 %v1068_v18 }
 0x405   : > { %1438 = vmatpush3.bf16.msra.mxu1 %v1068_v18 }
 0x408   : > { %1440 = vmatmul.mubr.msk.bf16.vlgmr.msra.gmra.mrb[20].mxu1 %vm675_vm1, %v1506_v20 }
 0x4db   : > { %v1441_v24 = vpop.f32.mrb[20].mxu1 }
 0x4dc   : > { %v1156_v25 = vadd.f32 %v1441_v24, %v1090_v23  ;;  %v1147_v26 = vpop.f32.mrb[21].mxu1 }
 0x4dd   : > { %v1148_v28 = vadd.f32 %v1147_v26, %v1080_v21  ;;  %v1442_v29 = vpop.f32.mrb[22].mxu1 }
 0x4de   : > { %v1168_v30 = vmul.f32 0.2, %v1156_v25  ;;  %v1159_v31 = vadd.f32 %v1442_v29, %v1095_v27  ;;  %v1150_v32 = vpop.f32.mrb[23].mxu1  ;;  %vm1164_vm11 = vcmp.gt.f32.partialorder %v1156_v25, 0.0 }
 0x4df   : > { %v1166_v33 = vmul.f32 0.2, %v1148_v28  ;;  %v1151_v34 = vadd.f32 %v1150_v32, %v1085_v22  ;;  %vm1162_vm12 = vcmp.gt.f32.partialorder %v1148_v28, 0.0 }
 0x4e0   : > { %vm1165_vm13 = vcmp.gt.f32.partialorder %v1159_v31, 0.0  ;;  %v1169_v35 = vmul.f32 0.2, %v1159_v31  ;;  %v1172_v37 = vsel %vm1164_vm11, %v1156_v25, %v1168_v30 }
 0x4e1   : > { %vm1163_vm14 = vcmp.gt.f32.partialorder %v1151_v34, 0.0  ;;  %v1167_v36 = vmul.f32 0.2, %v1151_v34  ;;  %v1170_v40 = vsel %vm1162_vm12, %v1148_v28, %v1166_v33 }
 0x4e2   : > { %v1173_v38 = vsel %vm1165_vm13, %v1159_v31, %v1169_v35 }
 0x4e3   : > { %v1175_v41 = vpack.c.bf16 %v1173_v38, %v1172_v37  ;;  %v1171_v42 = vsel %vm1163_vm14, %v1151_v34, %v1167_v36 }
 0x4e4   : > { %v1174_v43 = vpack.c.bf16 %v1171_v42, %v1170_v40 }
 0x4e5   : > { %v1182_v45 = vunpack.c.l.bf16 %v1175_v41  ;;  %v1183_v48 = vunpack.c.h.bf16 %v1175_v41 }
 0x4e6   : > { %v1180_v46 = vunpack.c.l.bf16 %v1174_v43  ;;  %v1181_v47 = vunpack.c.h.bf16 %v1174_v43 }
 0x4e7   : > { %v1206_v52 = vmul.f32 %v1197_v51, %v1182_v45  ;;  %v1207_v55 = vmul.f32 %v1202_v54, %v1183_v48 }
 0x4e8   : > { %v1204_v49 = vmul.f32 %v1187_v39, %v1180_v46  ;;  %v1205_v50 = vmul.f32 %v1192_v44, %v1181_v47 }
 0x4ea   : > { %v1208_v53 = vadd.f32 %v1205_v50, %v1204_v49 }
 0x4ec   : > { %v1209_v56 = vadd.f32 %v1208_v53, %v1206_v52 }
 0x4ee   : > { %v1210_v58 = vadd.f32 %v1209_v56, %v1207_v55 }
 0x4f0   : > { %v1211_v59 = vrot.slane %v1210_v58, 4 }
 0x4f2   : > { %v1212_v61 = vadd.f32 %v1211_v59, %v1210_v58 }
 0x4f4   : > { %v1213_v62 = vrot.slane %v1212_v61, 2 }
 0x4f6   : > { %v1214_v0 = vadd.f32 %v1213_v62, %v1212_v61 }
 0x4f8   : > { %v1215_v2 = vrot.slane %v1214_v0, 1 }
 0x4fa   : > { %v1216_v4 = vadd.f32 %v1215_v2, %v1214_v0 }
 0x4fc   : > { %v1227_v5 = vadd.f32 %v1226_v3, %v1216_v4 }
 0x4fe   : > { %v1337_v6 = vmul.f32 -1.442695, %v1227_v5 }
 0x500   : > { %1507 = vpow2.f32 %v1337_v6 }
 0x50a   : > { %v1508_v7 = vpop.eup %1507 }
 0x50b   : > { %v1231_v8 = vadd.f32 1.0, %v1508_v7 }
 0x50d   : > { %1509 = vrcp.f32 %v1231_v8 }
 0x517   : > { %v1510_v9 = vpop.eup %1509 }
 0x518   : > { %1234 = vst [vmem:[%s435_s26] sm:$0x1] %v1510_v9 }
 0x519   : > { %1524 = shalt.err (!%p1521_p3)
}
 0x51a   : > { %s1525_s21 = scalar_lea.hbm %s1893_s18, 16  ;;  %s1529_s14 = scalar_lea.hbm %s1948_s13, 32 }
 0x51b   : > { %p1526_p4 = scmp.ne.s32.totalorder %s1893_s18, %s1525_s21  ;;  %p1530_p9 = scmp.lt.u32.totalorder %s1893_s18, %s1948_s13 }
 0x51c   : > { %p1531_p10 = scmp.lt.u32.totalorder %s1529_s14, %s1525_s21  ;;  %p1533_p12 = scmp.lt.u32.totalorder %s1525_s21, %s1893_s18 }
 0x51d   : > { %p1527_p7 = pnand %p1526_p4, %p1685_p5 }
 0x51e   : > { %p1532_p11 = por %p1531_p10, %p1530_p9 }
 0x51f   : > { %p1528_p8 = pneg %p1527_p7 }
 0x520   : > { %p1534_p13 = por %p1533_p12, %p1532_p11 }
 0x522   : > { %p1535_p0 = pnand %p1534_p13, %p1528_p8 }
 0x524   : > { %1538 = shalt.err (!%p1535_p0)
}
 0x525   : > { %1451 = dma.vmem_to_hbm [thread:$0]  (%p1685_p5), %s1895_s25, 16, %s1893_s18, %s1236_s12  }
 0x526 PF: > { %p1457_p1 = scmp.ge.s32.totalorder %s1573_s30, 2  ;;  %s1260_s16 = sand.u32 1, %s1561_s27  }
 0x527   : > { %s1261_s22 = scalar_lea.sflag [#allocation4], %s1260_s16 }
 0x528   : > { %p1454_p2 = pnand %p1457_p1, %p1689_p6 }
 0x52a   : > { %1556 = dma.done.wait (!%p1454_p2), %s1261_s22, 16  }
 0x52b   : > { %1558 = vsyncadd (!%p1454_p2), %s1261_s22, 4294967280  ;;  %s1954_s23 = sld [smem:[#allocation6_spill]]  ;;  %s1955_s29 = sld [smem:[#allocation7_spill]] }
 0x52c   : > { %p25_p3 = scmp.ge.s32.totalorder %s1673_s15, 4   ;;  %s1956_s27 = smov %s1565_s28 }
 0x52d   : > { %s1958_s30 = smov %s1673_s15 }
 0x52e   :  { %27 = sbr.rel (!%p25_p3) target bundleno = 6 (0x6), region = 107 }
 0x531   : > { %s1957_s28 = smov %s1954_s23 }
 0x535   :  { %1265 = vsyncpa [#allocation4], 1 }
 0x536   :  { %1267 = vsyncpa [#allocation4 + $0x1], 1 }

// kernel: tpu_custom_call.1
= control target key start
LH: loop header
LB: loop body
LE: loop exit
PB: predicated region body
PF: predicated region fallthrough
CT: control target
= control target key end

     0   :  { %s1935_s0 = inlined_call_operand.vmem [shape: f32[256,64], index: 0, kind: input, shape index: {}]   ;;  %s1936_s1 = inlined_call_operand.vmem [shape: bf16[32,64], index: 1, kind: input, shape index: {}]   ;;  %s1937_s2 = inlined_call_operand.vmem [shape: f32[32,1], index: 2, kind: input, shape index: {}]   ;;  %s1938_s3 = inlined_call_operand.vmem [shape: bf16[64,32], index: 3, kind: input, shape index: {}]   ;;  %s1939_s4 = inlined_call_operand.vmem [shape: f32[64,1], index: 4, kind: input, shape index: {}]   ;;  %s1940_s5 = inlined_call_operand.vmem [shape: bf16[64,64], index: 5, kind: input, shape index: {}]   ;;  %s1941_s6 = inlined_call_operand.vmem [shape: f32[64,1], index: 6, kind: input, shape index: {}]   ;;  %s1942_s7 = inlined_call_operand.vmem [shape: bf16[32,64], index: 7, kind: input, shape index: {}]   ;;  %s1943_s8 = inlined_call_operand.vmem [shape: f32[32,1], index: 8, kind: input, shape index: {}]   ;;  %s1944_s9 = inlined_call_operand.vmem [shape: bf16[32,32], index: 9, kind: input, shape index: {}]   ;;  %s1945_s10 = inlined_call_operand.vmem [shape: f32[32,1], index: 10, kind: input, shape index: {}]   ;;  %s1946_s11 = inlined_call_operand.vmem [shape: f32[32,1], index: 11, kind: input, shape index: {}]   ;;  %s1947_s12 = inlined_call_operand.<no memory space> [shape: f32[1,1], index: 12, kind: input, shape index: {}]   ;;  %s1948_s13 = inlined_call_operand.hbm [shape: f32[1,256], index: 13, kind: output, shape index: {}]  }
   0x1   :  { %v18_v0 = vstv %s1947_s12 }
   0x2   :  { %19 = vst [vmem:[#allocation2] sm:$0x1] %v18_v0 }
   0x3   :  { %20 = vsyncpa [#allocation4], 0 }
   0x4   :  { %22 = vsyncpa [#allocation4 + $0x1], 0  ;;  %s1650_s27 = smov 0   ;;  %s1652_s28 = smov 0  }
   0x5   :  { %s1654_s29 = smov 0   ;;  %s1656_s30 = smov 0  }
   0x6 LB: > { %1950 = sst [smem:[#allocation6_spill]] %s1569_s29  ;;  %s1302_s12 = sadd.s32 4294967295, %s1573_s30   ;;  %s1573_s30 = sphi %s1656_s30, %s1958_s30   ;;  %s1569_s29 = sphi %s1654_s29, %s1955_s29   ;;  %s1565_s28 = sphi %s1652_s28, %s1957_s28   ;;  %s1561_s27 = sphi %s1650_s27, %s1956_s27  }
   0x7   : > { %s1303_s14 = sadd.s32 4294967294, %s1573_s30   ;;  %s1673_s15 = sadd.s32 1, %s1573_s30  }
   0x8   : > { %s313_s16 = sadd.s32 1, %s1569_s29  ;;  %s310_s17 = ssub.s32 %s1573_s30, %s1673_s15 }
   0x9   : > { %p323_p0 = scmp.ne.s32.totalorder %s1569_s29, %s1565_s28  ;;  %p311_p1 = scmp.eq.s32.totalorder %s310_s17, 0 }
   0xa   : > { %p324_p2 = scmp.eq.s32.totalorder %s1302_s12, 1  ;;  %p329_p3 = scmp.ne.s32.totalorder %s1565_s28, %s1561_s27 }
   0xb   : > { %p330_p4 = scmp.eq.s32.totalorder %s1303_s14, 1  ;;  %p1306_p7 = scmp.ge.s32.totalorder %s1573_s30, 1 }
   0xc   : > { %s1683_s18 = scalar_select %p311_p1, %s1569_s29, %s313_s16  }
   0xd   : > { %p1685_p5 = por %p324_p2, %p323_p0  ;;  %p1689_p6 = por %p330_p4, %p329_p3 }
   0xe   : > { %1951 = sst [smem:[#allocation7_spill]] %s1683_s18  ;;  %p393_p8 = scmp.lt.s32.totalorder %s1573_s30, 3 }
  0x10   : > { %p394_p9 = pnand %p1306_p7, %p393_p8 }
  0x11   : > { %s1695_s21 = sshll.u32 (!%p394_p9), %s1302_s12, 4  ;;  %v1493_v1 = vld [vmem:[%s1936_s1] sm:$0xff] (!%p394_p9)   ;;  %vm505_vm0 = vcmask (!%p394_p9), 523264   ;;  %v1575_v3 = vmov (!%p394_p9), 0   ;;  %v473_v4 = vld [vmem:[%s1937_s2 + $0x10] sm:$0xff] (!%p394_p9)  ;;  %v472_v5 = vld [vmem:[%s1937_s2 + $0x8] sm:$0xff] (!%p394_p9) }
  0x12   : > { %397 = sbr.rel (%p394_p9) target bundleno = 1318 (0x526), region = 72  ;;  %p437_p10 = scmp.lt.s32.totalorder (!%p394_p9), %s1695_s21, 31  ;;  %v471_v2 = vld [vmem:[%s1937_s2] sm:$0xff] (!%p394_p9)  ;;  %1391 = vmatprep.mubr.msk.bf16.mxu0 (!%p394_p9), %vm505_vm0, %v1493_v1  ;;  %1491 = vset.pattern.permute.xlu0 (!%p394_p9), %v1575_v3  ;;  %v474_v6 = vld [vmem:[%s1937_s2 + $0x18] sm:$0xff] (!%p394_p9)  ;;  %v608_v15 = vld [vmem:[%s1939_s4 + $0x8] sm:$0xff] (!%p394_p9)  ;;  %vm675_vm1 = vcmask (!%p394_p9), 261120  }
  0x13   : > { %477 = vperm.xlu0 (!%p394_p9), %1491, %v471_v2   ;;  %1492 = vset.pattern.permute.xlu1 (!%p394_p9), %v1575_v3  ;;  %v607_v13 = vld [vmem:[%s1939_s4] sm:$0xff] (!%p394_p9)  ;;  %v609_v18 = vld [vmem:[%s1939_s4 + $0x10] sm:$0xff] (!%p394_p9)  ;;  %v610_v20 = vld [vmem:[%s1939_s4 + $0x18] sm:$0xff] (!%p394_p9)  ;;  %s434_s24 = sand.u32 (!%p394_p9), 1, %s1565_s28   ;;  %s1893_s18 = scalar_lea.hbm (!%p394_p9), %s1948_s13, %s1695_s21 }
  0x14   : > { %487 = vperm.xlu1 (!%p394_p9), %1492, %v473_v4   ;;  %v611_v22 = vld [vmem:[%s1939_s4 + $0x20] sm:$0xff] (!%p394_p9)  ;;  %v612_v24 = vld [vmem:[%s1939_s4 + $0x28] sm:$0xff] (!%p394_p9)  ;;  %v613_v27 = vld [vmem:[%s1939_s4 + $0x30] sm:$0xff] (!%p394_p9)  ;;  %s1236_s12 = scalar_lea.sflag (!%p394_p9), [#allocation4], %s434_s24  ;;  %s1576_s17 = smov (!%p394_p9), [#allocation3]  }
  0x15   : > { %v614_v28 = vld [vmem:[%s1939_s4 + $0x38] sm:$0xff] (!%p394_p9)  ;;  %v789_v29 = vld [vmem:[%s1941_s6] sm:$0xff] (!%p394_p9)  ;;  %v790_v31 = vld [vmem:[%s1941_s6 + $0x8] sm:$0xff] (!%p394_p9)  ;;  %s1515_s22 = sshll.u32 (!%p394_p9), %s1576_s17, 4  ;;  %s1516_s22 = int_to_ptr.vmem [resolvable:$false] %s1515_s22 }
  0x16   : > { %v791_v34 = vld [vmem:[%s1941_s6 + $0x10] sm:$0xff] (!%p394_p9)  ;;  %v792_v35 = vld [vmem:[%s1941_s6 + $0x18] sm:$0xff] (!%p394_p9)  ;;  %v793_v38 = vld [vmem:[%s1941_s6 + $0x20] sm:$0xff] (!%p394_p9)  ;;  %s1517_s23 = scalar_lea.vmem (!%p394_p9), %s1516_s22, 32 }
  0x17   : > { %482 = vperm.xlu0 (!%p394_p9), %1491, %v472_v5   ;;  %v794_v39 = vld [vmem:[%s1941_s6 + $0x28] sm:$0xff] (!%p394_p9)  ;;  %v795_v42 = vld [vmem:[%s1941_s6 + $0x30] sm:$0xff] (!%p394_p9)  ;;  %v796_v43 = vld [vmem:[%s1941_s6 + $0x38] sm:$0xff] (!%p394_p9) }
  0x18   : > { %492 = vperm.xlu1 (!%p394_p9), %1492, %v474_v6   ;;  %v966_v46 = vld [vmem:[%s1943_s8] sm:$0xff] (!%p394_p9)  ;;  %v967_v47 = vld [vmem:[%s1943_s8 + $0x8] sm:$0xff] (!%p394_p9)  ;;  %v968_v50 = vld [vmem:[%s1943_s8 + $0x10] sm:$0xff] (!%p394_p9) }
  0x19   : > { %s438_s26 = scalar_select %p437_p10, %s1695_s21, 31  ;;  %v969_v51 = vld [vmem:[%s1943_s8 + $0x18] sm:$0xff]  ;;  %v1073_v54 = vld [vmem:[%s1945_s10] sm:$0xff]  ;;  %v1074_v55 = vld [vmem:[%s1945_s10 + $0x8] sm:$0xff] }
  0x1a   : > { %v1075_v58 = vld [vmem:[%s1945_s10 + $0x10] sm:$0xff]  ;;  %v1076_v59 = vld [vmem:[%s1945_s10 + $0x18] sm:$0xff]  ;;  %v1176_v62 = vld [vmem:[%s1946_s11] sm:$0xff] }
  0x1b   : > { %s1308_s16 = sshll.u32 %s438_s26, 3  ;;  %617 = vperm.xlu0 %1491, %v607_v13   ;;  %v1177_v63 = vld [vmem:[%s1946_s11 + $0x8] sm:$0xff]  ;;  %v1178_v0 = vld [vmem:[%s1946_s11 + $0x10] sm:$0xff]  ;;  %v1179_v1 = vld [vmem:[%s1946_s11 + $0x18] sm:$0xff]  ;;  %s435_s26 = scalar_lea.vmem [#allocation3], %s434_s24 }
  0x1c   : > { %s1715_s25 = scalar_lea.vmem %s1935_s0, %s1308_s16  ;;  %622 = vperm.xlu1 %1492, %v608_v15   ;;  %v1217_v3 = vld [vmem:[#allocation2] sm:$0x1]  ;;  %v1494_v4 = vld [vmem:[%s1936_s1 + $0x8] sm:$0xff]  }
  0x1d   : > { %v443_v7 = vld [vmem:[%s1715_s25] sm:$0xff]  ;;  %v444_v8 = vld [vmem:[%s1715_s25 + $0x8] sm:$0xff]  ;;  %v445_v9 = vld [vmem:[%s1715_s25 + $0x10] sm:$0xff] }
  0x1e   : > { %v459_v10 = vpack.c.bf16 %v444_v8, %v443_v7  ;;  %v446_v11 = vld [vmem:[%s1715_s25 + $0x18] sm:$0xff]  ;;  %v447_v16 = vld [vmem:[%s1715_s25 + $0x20] sm:$0xff]  ;;  %v448_v17 = vld [vmem:[%s1715_s25 + $0x28] sm:$0xff] }
  0x1f   : > { %v460_v12 = vpack.c.bf16 %v446_v11, %v445_v9  ;;  %v461_v19 = vpack.c.bf16 %v448_v17, %v447_v16  ;;  %627 = vperm.xlu0 %1491, %v609_v18   ;;  %v449_v25 = vld [vmem:[%s1715_s25 + $0x30] sm:$0xff]  ;;  %v450_v26 = vld [vmem:[%s1715_s25 + $0x38] sm:$0xff]  ;;  %v451_v32 = vld [vmem:[%s1715_s25 + $0x40] sm:$0xff] }
  0x20   : > { %1443 = vmatprep.subr.msk.bf16.mxu0 %vm505_vm0, %v459_v10  ;;  %v513_v14 = vsel %vm505_vm0, %v459_v10, 0  ;;  %632 = vperm.xlu1 %1492, %v610_v20   ;;  %v462_v30 = vpack.c.bf16 %v450_v26, %v449_v25  ;;  %v452_v33 = vld [vmem:[%s1715_s25 + $0x48] sm:$0xff]  ;;  %v453_v40 = vld [vmem:[%s1715_s25 + $0x50] sm:$0xff]  ;;  %v454_v41 = vld [vmem:[%s1715_s25 + $0x58] sm:$0xff] }
  0x21   : > { %1376 = vmatpush3.bf16.xpose.msra.mxu0 %v513_v14  ;;  %v516_v21 = vsel %vm505_vm0, %v460_v12, 0  ;;  %v519_v23 = vsel %vm505_vm0, %v461_v19, 0  ;;  %v463_v37 = vpack.c.bf16 %v452_v33, %v451_v32  ;;  %v464_v45 = vpack.c.bf16 %v454_v41, %v453_v40  ;;  %v455_v48 = vld [vmem:[%s1715_s25 + $0x60] sm:$0xff]  ;;  %v456_v49 = vld [vmem:[%s1715_s25 + $0x68] sm:$0xff]  ;;  %v457_v56 = vld [vmem:[%s1715_s25 + $0x70] sm:$0xff] }
  0x22   : > { %1444 = vmatprep.subr.msk.bf16.mxu0 %vm505_vm0, %v460_v12  ;;  %v522_v36 = vsel %vm505_vm0, %v462_v30, 0  ;;  %v465_v53 = vpack.c.bf16 %v456_v49, %v455_v48  ;;  %v458_v57 = vld [vmem:[%s1715_s25 + $0x78] sm:$0xff]  ;;  %v1495_v5 = vld [vmem:[%s1938_s3] sm:$0xff]   ;;  %s1248_s25 = sshll.u32 %s435_s26, 4  ;;  %s1895_s25 = int_to_ptr.vmem [resolvable:$true] %s1248_s25 }
  0x23   : > { %637 = vperm.xlu0 %1491, %v611_v22   ;;  %v525_v44 = vsel %vm505_vm0, %v463_v37, 0  ;;  %v528_v52 = vsel %vm505_vm0, %v464_v45, 0  ;;  %v466_v61 = vpack.c.bf16 %v458_v57, %v457_v56  ;;  %1399 = vmatprep.mubr.msk.bf16.mxu1 %vm675_vm1, %v1495_v5  ;;  %s1511_s16 = scalar_lea.vmem %s1895_s25, 16  ;;  %p1518_p0 = scmp.lt.s32.totalorder %s1895_s25, %s1516_s22 }
  0x24   : > { %642 = vperm.xlu1 %1492, %v612_v24   ;;  %v531_v60 = vsel %vm505_vm0, %v465_v53, 0  ;;  %p1512_p11 = scmp.ne.s32.totalorder %s1895_s25, %s1511_s16  ;;  %p1519_p1 = scmp.lt.s32.totalorder %s1517_s23, %s1511_s16 }
  0x25   : > { %v534_v2 = vsel %vm505_vm0, %v466_v61, 0 }
  0x26   : > { %p1513_p12 = pnand %p1512_p11, %p1685_p5  ;;  %p1520_p2 = por %p1519_p1, %p1518_p0 }
  0x27   : > { %647 = vperm.xlu0 %1491, %v613_v27  }
  0x28   : > { %652 = vperm.xlu1 %1492, %v614_v28   ;;  %v1496_v28 = vld [vmem:[%s1938_s3 + $0x8] sm:$0xff]   ;;  %p1514_p13 = pneg %p1513_p12 }
  0x29   : > { %1378 = vmatpush3.bf16.xpose.msra.mxu0 %v516_v21 }
  0x2a   : > { %1445 = vmatprep.subr.msk.bf16.mxu0 %vm505_vm0, %v461_v19  ;;  %p1521_p3 = pnand %p1520_p2, %p1514_p13 }
  0x2b   : > { %799 = vperm.xlu0 %1491, %v789_v29   ;;  %v1497_v29 = vld [vmem:[%s1938_s3 + $0x10] sm:$0xff]  }
  0x2c   : > { %804 = vperm.xlu1 %1492, %v790_v31   ;;  %v1499_v31 = vld [vmem:[%s1940_s5] sm:$0xff]  }
  0x2f   : > { %809 = vperm.xlu0 %1491, %v791_v34  }
  0x30   : > { %814 = vperm.xlu1 %1492, %v792_v35  }
  0x31   : > { %1380 = vmatpush3.bf16.xpose.msra.mxu0 %v519_v23 }
  0x32   : > { %1446 = vmatprep.subr.msk.bf16.mxu0 %vm505_vm0, %v462_v30  ;;  %v1498_v30 = vld [vmem:[%s1938_s3 + $0x18] sm:$0xff]  }
  0x33   : > { %819 = vperm.xlu0 %1491, %v793_v38  }
  0x34   : > { %824 = vperm.xlu1 %1492, %v794_v39  }
  0x37   : > { %829 = vperm.xlu0 %1491, %v795_v42  }
  0x38   : > { %834 = vperm.xlu1 %1492, %v796_v43  }
  0x39   : > { %1382 = vmatpush3.bf16.xpose.msra.mxu0 %v522_v36 }
  0x3a   : > { %1447 = vmatprep.subr.msk.bf16.mxu0 %vm505_vm0, %v463_v37 }
  0x3b   : > { %972 = vperm.xlu0 %1491, %v966_v46  }
  0x3c   : > { %977 = vperm.xlu1 %1492, %v967_v47  }
  0x3f   : > { %982 = vperm.xlu0 %1491, %v968_v50  }
  0x40   : > { %987 = vperm.xlu1 %1492, %v969_v51  }
  0x41   : > { %1384 = vmatpush3.bf16.xpose.msra.mxu0 %v525_v44 }
  0x42   : > { %1448 = vmatprep.subr.msk.bf16.mxu0 %vm505_vm0, %v464_v45 }
  0x43   : > { %1079 = vperm.xlu0 %1491, %v1073_v54  }
  0x44   : > { %1084 = vperm.xlu1 %1492, %v1074_v55  }
  0x47   : > { %1089 = vperm.xlu0 %1491, %v1075_v58  }
  0x48   : > { %1094 = vperm.xlu1 %1492, %v1076_v59  }
  0x49   : > { %1386 = vmatpush3.bf16.xpose.msra.mxu0 %v528_v52 }
  0x4a   : > { %1449 = vmatprep.subr.msk.bf16.mxu0 %vm505_vm0, %v465_v53 }
  0x4b   : > { %1186 = vperm.xlu0 %1491, %v1176_v62  }
  0x4c   : > { %1191 = vperm.xlu1 %1492, %v1177_v63  }
  0x4f   : > { %1196 = vperm.xlu0 %1491, %v1178_v0  }
  0x50   : > { %1201 = vperm.xlu1 %1492, %v1179_v1  }
  0x51   : > { %1388 = vmatpush3.bf16.xpose.msra.mxu0 %v531_v60 }
  0x52   : > { %1450 = vmatprep.subr.msk.bf16.mxu0 %vm505_vm0, %v466_v61 }
  0x53   : > { %1220 = vperm.xlu0 %1491, %v1217_v3  }
  0x59   : > { %1390 = vmatpush3.bf16.xpose.msra.mxu0 %v534_v2 }
  0x60   : > { %1392 = vmatmul.mubr.msk.bf16.vlgmr.msra.gmra.mrb[0].mxu0 %vm505_vm0, %v1494_v4 }
  0x92   : > { %v478_v7 = vpop.permute.xlu0 %477 }
  0x93   : > { %v488_v6 = vpop.permute.xlu1 %487 }
  0x96   : > { %v483_v14 = vpop.permute.xlu0 %482 }
  0x97   : > { %v493_v11 = vpop.permute.xlu1 %492 }
  0x9a   : > { %v618_v32 = vpop.permute.xlu0 %617 }
  0x9b   : > { %v623_v33 = vpop.permute.xlu1 %622 }
  0x9e   : > { %v628_v34 = vpop.permute.xlu0 %627 }
  0x9f   : > { %v633_v35 = vpop.permute.xlu1 %632 }
  0xa2   : > { %v638_v39 = vpop.permute.xlu0 %637 }
  0xa3   : > { %v643_v45 = vpop.permute.xlu1 %642 }
  0xa6   : > { %v648_v52 = vpop.permute.xlu0 %647 }
  0xa7   : > { %v653_v60 = vpop.permute.xlu1 %652 }
 0x133   : > { %v1393_v8 = vpop.f32.mrb[0].mxu0 }
 0x134   : > { %v579_v9 = vadd.f32 %v1393_v8, %v488_v6  ;;  %v570_v10 = vpop.f32.mrb[1].mxu0 }
 0x135   : > { %v571_v12 = vadd.f32 %v570_v10, %v478_v7  ;;  %v1394_v13 = vpop.f32.mrb[2].mxu0 }
 0x136   : > { %v591_v15 = vmul.f32 0.2, %v579_v9  ;;  %v582_v16 = vadd.f32 %v1394_v13, %v493_v11  ;;  %v573_v17 = vpop.f32.mrb[3].mxu0  ;;  %vm587_vm2 = vcmp.gt.f32.partialorder %v579_v9, 0.0  ;;  %v1501_v13 = vld [vmem:[%s1940_s5 + $0x10] sm:$0xff]  }
 0x137   : > { %v589_v18 = vmul.f32 0.2, %v571_v12  ;;  %v574_v19 = vadd.f32 %v573_v17, %v483_v14  ;;  %vm585_vm4 = vcmp.gt.f32.partialorder %v571_v12, 0.0  ;;  %v1502_v14 = vld [vmem:[%s1940_s5 + $0x18] sm:$0xff]   ;;  %v805_v17 = vpop.permute.xlu1 %804 }
 0x138   : > { %vm588_vm3 = vcmp.gt.f32.partialorder %v582_v16, 0.0  ;;  %v592_v20 = vmul.f32 0.2, %v582_v16  ;;  %v595_v22 = vsel %vm587_vm2, %v579_v9, %v591_v15  ;;  %v1503_v15 = vld [vmem:[%s1942_s7] sm:$0xff]  }
 0x139   : > { %v590_v21 = vmul.f32 0.2, %v574_v19  ;;  %vm586_vm5 = vcmp.gt.f32.partialorder %v574_v19, 0.0  ;;  %v593_v24 = vsel %vm585_vm4, %v571_v12, %v589_v18  ;;  %v1500_v12 = vld [vmem:[%s1940_s5 + $0x8] sm:$0xff]  }
 0x13a   : > { %v596_v23 = vsel %vm588_vm3, %v582_v16, %v592_v20  ;;  %v800_v16 = vpop.permute.xlu0 %799 }
 0x13b   : > { %v594_v25 = vsel %vm586_vm5, %v574_v19, %v590_v21  ;;  %v598_v26 = vpack.c.bf16 %v596_v23, %v595_v22  ;;  %v815_v19 = vpop.permute.xlu1 %814 }
 0x13c   : > { %v597_v27 = vpack.c.bf16 %v594_v25, %v593_v24 }
 0x13e   : > { %1395 = vmatprep.subr.bf16.mxu1 %v597_v27  ;;  %v810_v18 = vpop.permute.xlu0 %809 }
 0x13f   : > { %1396 = vmatpush3.bf16.msra.mxu1 %v597_v27 }
 0x140   : > { %1397 = vmatprep.subr.bf16.mxu1 %v598_v26 }
 0x142   : > { %v820_v23 = vpop.permute.xlu0 %819 }
 0x143   : > { %1398 = vmatpush3.bf16.msra.mxu1 %v598_v26 }
 0x146   : > { %1400 = vmatmul.mubr.msk.bf16.vlgmr.msra.gmra.mrb[0].mxu1 %vm675_vm1, %v1496_v28 }
 0x147   : > { %1403 = vmatprep.mubr.msk.bf16.mxu1 %vm675_vm1, %v1497_v29  ;;  %v825_v29 = vpop.permute.xlu1 %824 }
 0x14e   : > { %1404 = vmatmul.mubr.msk.bf16.gmra.mrb[4].mxu1 %vm675_vm1, %v1498_v30 }
 0x14f   : > { %1415 = vmatprep.mubr.msk.bf16.mxu1 %vm505_vm0, %v1499_v31 }
 0x219   : > { %v1401_v36 = vpop.f32.mrb[0].mxu1 }
 0x21a   : > { %v731_v37 = vadd.f32 %v1401_v36, %v628_v34  ;;  %v722_v38 = vpop.f32.mrb[1].mxu1  ;;  %v830_v36 = vpop.permute.xlu0 %829 }
 0x21b   : > { %v723_v40 = vadd.f32 %v722_v38, %v618_v32  ;;  %v1402_v41 = vpop.f32.mrb[2].mxu1 }
 0x21c   : > { %v763_v42 = vmul.f32 0.2, %v731_v37  ;;  %v734_v43 = vadd.f32 %v1402_v41, %v633_v35  ;;  %v725_v44 = vpop.f32.mrb[3].mxu1  ;;  %vm755_vm6 = vcmp.gt.f32.partialorder %v731_v37, 0.0 }
 0x21d   : > { %v761_v46 = vmul.f32 0.2, %v723_v40  ;;  %v726_v47 = vadd.f32 %v725_v44, %v623_v33  ;;  %vm753_vm7 = vcmp.gt.f32.partialorder %v723_v40, 0.0  ;;  %v835_v44 = vpop.permute.xlu1 %834 }
 0x21e   : > { %vm756_vm8 = vcmp.gt.f32.partialorder %v734_v43, 0.0  ;;  %v764_v48 = vmul.f32 0.2, %v734_v43  ;;  %v771_v50 = vsel %vm755_vm6, %v731_v37, %v763_v42 }
 0x21f   : > { %vm754_vm9 = vcmp.gt.f32.partialorder %v726_v47, 0.0  ;;  %v762_v49 = vmul.f32 0.2, %v726_v47  ;;  %v769_v54 = vsel %vm753_vm7, %v723_v40, %v761_v46 }
 0x220   : > { %v772_v51 = vsel %vm756_vm8, %v734_v43, %v764_v48 }
 0x221   : > { %v1405_v53 = vpop.f32.mrb[4].mxu1  ;;  %v770_v55 = vsel %vm754_vm9, %v726_v47, %v762_v49  ;;  %v778_v56 = vpack.c.bf16 %v772_v51, %v771_v50 }
 0x222   : > { %v747_v57 = vadd.f32 %v1405_v53, %v648_v52  ;;  %v738_v58 = vpop.f32.mrb[5].mxu1  ;;  %v777_v59 = vpack.c.bf16 %v770_v55, %v769_v54 }
 0x223   : > { %v739_v61 = vadd.f32 %v738_v58, %v638_v39  ;;  %v1406_v62 = vpop.f32.mrb[6].mxu1 }
 0x224   : > { %v767_v63 = vmul.f32 0.2, %v747_v57  ;;  %v750_v0 = vadd.f32 %v1406_v62, %v653_v60  ;;  %v741_v1 = vpop.f32.mrb[7].mxu1  ;;  %1407 = vmatprep.subr.bf16.mxu1 %v777_v59  ;;  %vm759_vm10 = vcmp.gt.f32.partialorder %v747_v57, 0.0  ;;  %v1504_v60 = vld [vmem:[%s1942_s7 + $0x8] sm:$0xff]   ;;  %v973_v62 = vpop.permute.xlu0 %972 }
 0x225   : > { %v765_v2 = vmul.f32 0.2, %v739_v61  ;;  %v742_v3 = vadd.f32 %v741_v1, %v643_v45  ;;  %1408 = vmatpush3.bf16.msra.mxu1 %v777_v59  ;;  %vm757_vm11 = vcmp.gt.f32.partialorder %v739_v61, 0.0 }
 0x226   : > { %vm760_vm12 = vcmp.gt.f32.partialorder %v750_v0, 0.0  ;;  %v768_v4 = vmul.f32 0.2, %v750_v0  ;;  %1409 = vmatprep.subr.bf16.mxu1 %v778_v56  ;;  %v775_v6 = vsel %vm759_vm10, %v747_v57, %v767_v63  ;;  %v978_v63 = vpop.permute.xlu1 %977 }
 0x227   : > { %vm758_vm13 = vcmp.gt.f32.partialorder %v742_v3, 0.0  ;;  %v766_v5 = vmul.f32 0.2, %v742_v3  ;;  %v773_v8 = vsel %vm757_vm11, %v739_v61, %v765_v2  ;;  %v1505_v61 = vld [vmem:[%s1944_s9] sm:$0xff]  }
 0x228   : > { %v776_v7 = vsel %vm760_vm12, %v750_v0, %v768_v4  ;;  %v983_v0 = vpop.permute.xlu0 %982 }
 0x229   : > { %1410 = vmatpush3.bf16.msra.mxu1 %v778_v56  ;;  %v774_v9 = vsel %vm758_vm13, %v742_v3, %v766_v5  ;;  %v780_v10 = vpack.c.bf16 %v776_v7, %v775_v6 }
 0x22a   : > { %v779_v11 = vpack.c.bf16 %v774_v9, %v773_v8  ;;  %v988_v4 = vpop.permute.xlu1 %987 }
 0x22c   : > { %1411 = vmatprep.subr.bf16.mxu1 %v779_v11 }
 0x22d   : > { %1412 = vmatpush3.bf16.msra.mxu1 %v779_v11 }
 0x22e   : > { %1413 = vmatprep.subr.bf16.mxu1 %v780_v10 }
 0x231   : > { %1414 = vmatpush3.bf16.msra.mxu1 %v780_v10 }
 0x234   : > { %1416 = vmatmul.mubr.msk.bf16.vlgmr.msra.gmra.mrb[8].mxu1 %vm505_vm0, %v1500_v12 }
 0x235   : > { %1419 = vmatprep.mubr.msk.bf16.mxu1 %vm505_vm0, %v1501_v13 }
 0x23c   : > { %1420 = vmatmul.mubr.msk.bf16.gmra.mrb[12].mxu1 %vm505_vm0, %v1502_v14 }
 0x23d   : > { %1431 = vmatprep.mubr.msk.bf16.mxu1 %vm505_vm0, %v1503_v15 }
 0x307   : > { %v1417_v20 = vpop.f32.mrb[8].mxu1 }
 0x308   : > { %v912_v21 = vadd.f32 %v1417_v20, %v810_v18  ;;  %v903_v22 = vpop.f32.mrb[9].mxu1  ;;  %v1506_v20 = vld [vmem:[%s1944_s9 + $0x8] sm:$0xff]  }
 0x309   : > { %v904_v24 = vadd.f32 %v903_v22, %v800_v16  ;;  %v1418_v25 = vpop.f32.mrb[10].mxu1  ;;  %v1085_v22 = vpop.permute.xlu1 %1084 }
 0x30a   : > { %v944_v26 = vmul.f32 0.2, %v912_v21  ;;  %v915_v27 = vadd.f32 %v1418_v25, %v815_v19  ;;  %v906_v28 = vpop.f32.mrb[11].mxu1  ;;  %vm936_vm14 = vcmp.gt.f32.partialorder %v912_v21, 0.0 }
 0x30b   : > { %v942_v30 = vmul.f32 0.2, %v904_v24  ;;  %v907_v31 = vadd.f32 %v906_v28, %v805_v17  ;;  %vm934_vm15 = vcmp.gt.f32.partialorder %v904_v24, 0.0 }
 0x30c   : > { %vm937_vm2 = vcmp.gt.f32.partialorder %v915_v27, 0.0  ;;  %v945_v32 = vmul.f32 0.2, %v915_v27  ;;  %v952_v34 = vsel %vm936_vm14, %v912_v21, %v944_v26  ;;  %v1080_v21 = vpop.permute.xlu0 %1079 }
 0x30d   : > { %vm935_vm3 = vcmp.gt.f32.partialorder %v907_v31, 0.0  ;;  %v943_v33 = vmul.f32 0.2, %v907_v31  ;;  %v950_v38 = vsel %vm934_vm15, %v904_v24, %v942_v30 }
 0x30e   : > { %v953_v35 = vsel %vm937_vm2, %v915_v27, %v945_v32  ;;  %v1095_v27 = vpop.permute.xlu1 %1094 }
 0x30f   : > { %v1421_v37 = vpop.f32.mrb[12].mxu1  ;;  %v951_v39 = vsel %vm935_vm3, %v907_v31, %v943_v33  ;;  %v959_v40 = vpack.c.bf16 %v953_v35, %v952_v34 }
 0x310   : > { %v928_v41 = vadd.f32 %v1421_v37, %v830_v36  ;;  %v919_v42 = vpop.f32.mrb[13].mxu1  ;;  %v958_v43 = vpack.c.bf16 %v951_v39, %v950_v38 }
 0x311   : > { %v920_v45 = vadd.f32 %v919_v42, %v820_v23  ;;  %v1422_v46 = vpop.f32.mrb[14].mxu1  ;;  %v1090_v23 = vpop.permute.xlu0 %1089 }
 0x312   : > { %v948_v47 = vmul.f32 0.2, %v928_v41  ;;  %v931_v48 = vadd.f32 %v1422_v46, %v835_v44  ;;  %v922_v49 = vpop.f32.mrb[15].mxu1  ;;  %1423 = vmatprep.subr.bf16.mxu1 %v958_v43  ;;  %vm940_vm4 = vcmp.gt.f32.partialorder %v928_v41, 0.0  ;;  %v1192_v44 = vpop.permute.xlu1 %1191 }
 0x313   : > { %v946_v50 = vmul.f32 0.2, %v920_v45  ;;  %v923_v51 = vadd.f32 %v922_v49, %v825_v29  ;;  %1424 = vmatpush3.bf16.msra.mxu1 %v958_v43  ;;  %vm938_vm5 = vcmp.gt.f32.partialorder %v920_v45, 0.0 }
 0x314   : > { %vm941_vm6 = vcmp.gt.f32.partialorder %v931_v48, 0.0  ;;  %v949_v52 = vmul.f32 0.2, %v931_v48  ;;  %1425 = vmatprep.subr.bf16.mxu1 %v959_v40  ;;  %v956_v54 = vsel %vm940_vm4, %v928_v41, %v948_v47 }
 0x315   : > { %vm939_vm7 = vcmp.gt.f32.partialorder %v923_v51, 0.0  ;;  %v947_v53 = vmul.f32 0.2, %v923_v51  ;;  %v954_v56 = vsel %vm938_vm5, %v920_v45, %v946_v50  ;;  %v1187_v39 = vpop.permute.xlu0 %1186 }
 0x316   : > { %v957_v55 = vsel %vm941_vm6, %v931_v48, %v949_v52 }
 0x317   : > { %1426 = vmatpush3.bf16.msra.mxu1 %v959_v40  ;;  %v955_v57 = vsel %vm939_vm7, %v923_v51, %v947_v53  ;;  %v961_v58 = vpack.c.bf16 %v957_v55, %v956_v54  ;;  %v1202_v54 = vpop.permute.xlu1 %1201 }
 0x318   : > { %v960_v59 = vpack.c.bf16 %v955_v57, %v954_v56  ;;  %v1223_v57 = vlaneseq }
 0x319   : > { %v1197_v51 = vpop.permute.xlu0 %1196 }
 0x31a   : > { %1427 = vmatprep.subr.bf16.mxu1 %v960_v59 }
 0x31b   : > { %1428 = vmatpush3.bf16.msra.mxu1 %v960_v59 }
 0x31c   : > { %1429 = vmatprep.subr.bf16.mxu1 %v961_v58 }
 0x31f   : > { %1430 = vmatpush3.bf16.msra.mxu1 %v961_v58 }
 0x322   : > { %1432 = vmatmul.mubr.msk.bf16.vlgmr.msra.gmra.mrb[16].mxu1 %vm505_vm0, %v1504_v60  ;;  %v1224_v60 = vshrl.u32 %v1223_v57, 7 }
 0x323   : > { %1439 = vmatprep.mubr.msk.bf16.mxu1 %vm675_vm1, %v1505_v61 }
 0x3f5   : > { %v1433_v1 = vpop.f32.mrb[16].mxu1 }
 0x3f6   : > { %v1049_v2 = vadd.f32 %v1433_v1, %v983_v0  ;;  %v1040_v3 = vpop.f32.mrb[17].mxu1  ;;  %v1221_v1 = vpop.permute.xlu0 %1220 }
 0x3f7   : > { %v1041_v5 = vadd.f32 %v1040_v3, %v973_v62  ;;  %v1434_v6 = vpop.f32.mrb[18].mxu1 }
 0x3f8   : > { %v1061_v7 = vmul.f32 0.2, %v1049_v2  ;;  %v1052_v8 = vadd.f32 %v1434_v6, %v988_v4  ;;  %v1043_v9 = vpop.f32.mrb[19].mxu1  ;;  %vm1057_vm8 = vcmp.gt.f32.partialorder %v1049_v2, 0.0 }
 0x3f9   : > { %v1059_v10 = vmul.f32 0.2, %v1041_v5  ;;  %v1044_v11 = vadd.f32 %v1043_v9, %v978_v63  ;;  %vm1055_vm0 = vcmp.gt.f32.partialorder %v1041_v5, 0.0  ;;  %v1225_v63 = vsub.s32 0, %v1224_v60 }
 0x3fa   : > { %vm1058_vm9 = vcmp.gt.f32.partialorder %v1052_v8, 0.0  ;;  %v1062_v12 = vmul.f32 0.2, %v1052_v8  ;;  %v1065_v14 = vsel %vm1057_vm8, %v1049_v2, %v1061_v7 }
 0x3fb   : > { %vm1056_vm10 = vcmp.gt.f32.partialorder %v1044_v11, 0.0  ;;  %v1060_v13 = vmul.f32 0.2, %v1044_v11  ;;  %v1063_v16 = vsel %vm1055_vm0, %v1041_v5, %v1059_v10  ;;  %v1226_v3 = vrot.slane %v1221_v1, %v1225_v63 }
 0x3fc   : > { %v1066_v15 = vsel %vm1058_vm9, %v1052_v8, %v1062_v12 }
 0x3fd   : > { %v1064_v17 = vsel %vm1056_vm10, %v1044_v11, %v1060_v13  ;;  %v1068_v18 = vpack.c.bf16 %v1066_v15, %v1065_v14 }
 0x3fe   : > { %v1067_v19 = vpack.c.bf16 %v1064_v17, %v1063_v16 }
 0x400   : > { %1435 = vmatprep.subr.bf16.mxu1 %v1067_v19 }
 0x401   : > { %1436 = vmatpush3.bf16.msra.mxu1 %v1067_v19 }
 0x402   : > { %1437 = vmatprep.subr.bf16.mxu1 %v1068_v18 }
 0x405   : > { %1438 = vmatpush3.bf16.msra.mxu1 %v1068_v18 }
 0x408   : > { %1440 = vmatmul.mubr.msk.bf16.vlgmr.msra.gmra.mrb[20].mxu1 %vm675_vm1, %v1506_v20 }
 0x4db   : > { %v1441_v24 = vpop.f32.mrb[20].mxu1 }
 0x4dc   : > { %v1156_v25 = vadd.f32 %v1441_v24, %v1090_v23  ;;  %v1147_v26 = vpop.f32.mrb[21].mxu1 }
 0x4dd   : > { %v1148_v28 = vadd.f32 %v1147_v26, %v1080_v21  ;;  %v1442_v29 = vpop.f32.mrb[22].mxu1 }
 0x4de   : > { %v1168_v30 = vmul.f32 0.2, %v1156_v25  ;;  %v1159_v31 = vadd.f32 %v1442_v29, %v1095_v27  ;;  %v1150_v32 = vpop.f32.mrb[23].mxu1  ;;  %vm1164_vm11 = vcmp.gt.f32.partialorder %v1156_v25, 0.0 }
 0x4df   : > { %v1166_v33 = vmul.f32 0.2, %v1148_v28  ;;  %v1151_v34 = vadd.f32 %v1150_v32, %v1085_v22  ;;  %vm1162_vm12 = vcmp.gt.f32.partialorder %v1148_v28, 0.0 }
 0x4e0   : > { %vm1165_vm13 = vcmp.gt.f32.partialorder %v1159_v31, 0.0  ;;  %v1169_v35 = vmul.f32 0.2, %v1159_v31  ;;  %v1172_v37 = vsel %vm1164_vm11, %v1156_v25, %v1168_v30 }
 0x4e1   : > { %vm1163_vm14 = vcmp.gt.f32.partialorder %v1151_v34, 0.0  ;;  %v1167_v36 = vmul.f32 0.2, %v1151_v34  ;;  %v1170_v40 = vsel %vm1162_vm12, %v1148_v28, %v1166_v33 }
 0x4e2   : > { %v1173_v38 = vsel %vm1165_vm13, %v1159_v31, %v1169_v35 }
 0x4e3   : > { %v1175_v41 = vpack.c.bf16 %v1173_v38, %v1172_v37  ;;  %v1171_v42 = vsel %vm1163_vm14, %v1151_v34, %v1167_v36 }
 0x4e4   : > { %v1174_v43 = vpack.c.bf16 %v1171_v42, %v1170_v40 }
 0x4e5   : > { %v1182_v45 = vunpack.c.l.bf16 %v1175_v41  ;;  %v1183_v48 = vunpack.c.h.bf16 %v1175_v41 }
 0x4e6   : > { %v1180_v46 = vunpack.c.l.bf16 %v1174_v43  ;;  %v1181_v47 = vunpack.c.h.bf16 %v1174_v43 }
 0x4e7   : > { %v1206_v52 = vmul.f32 %v1197_v51, %v1182_v45  ;;  %v1207_v55 = vmul.f32 %v1202_v54, %v1183_v48 }
 0x4e8   : > { %v1204_v49 = vmul.f32 %v1187_v39, %v1180_v46  ;;  %v1205_v50 = vmul.f32 %v1192_v44, %v1181_v47 }
 0x4ea   : > { %v1208_v53 = vadd.f32 %v1205_v50, %v1204_v49 }
 0x4ec   : > { %v1209_v56 = vadd.f32 %v1208_v53, %v1206_v52 }
 0x4ee   : > { %v1210_v58 = vadd.f32 %v1209_v56, %v1207_v55 }
 0x4f0   : > { %v1211_v59 = vrot.slane %v1210_v58, 4 }
 0x4f2   : > { %v1212_v61 = vadd.f32 %v1211_v59, %v1210_v58 }
 0x4f4   : > { %v1213_v62 = vrot.slane %v1212_v61, 2 }
 0x4f6   : > { %v1214_v0 = vadd.f32 %v1213_v62, %v1212_v61 }
 0x4f8   : > { %v1215_v2 = vrot.slane %v1214_v0, 1 }
 0x4fa   : > { %v1216_v4 = vadd.f32 %v1215_v2, %v1214_v0 }
 0x4fc   : > { %v1227_v5 = vadd.f32 %v1226_v3, %v1216_v4 }
 0x4fe   : > { %v1337_v6 = vmul.f32 -1.442695, %v1227_v5 }
 0x500   : > { %1507 = vpow2.f32 %v1337_v6 }
 0x50a   : > { %v1508_v7 = vpop.eup %1507 }
 0x50b   : > { %v1231_v8 = vadd.f32 1.0, %v1508_v7 }
 0x50d   : > { %1509 = vrcp.f32 %v1231_v8 }
 0x517   : > { %v1510_v9 = vpop.eup %1509 }
 0x518   : > { %1234 = vst [vmem:[%s435_s26] sm:$0x1] %v1510_v9 }
 0x519   : > { %1524 = shalt.err (!%p1521_p3)
}
 0x51a   : > { %s1525_s21 = scalar_lea.hbm %s1893_s18, 16  ;;  %s1529_s14 = scalar_lea.hbm %s1948_s13, 32 }
 0x51b   : > { %p1526_p4 = scmp.ne.s32.totalorder %s1893_s18, %s1525_s21  ;;  %p1530_p9 = scmp.lt.u32.totalorder %s1893_s18, %s1948_s13 }
 0x51c   : > { %p1531_p10 = scmp.lt.u32.totalorder %s1529_s14, %s1525_s21  ;;  %p1533_p12 = scmp.lt.u32.totalorder %s1525_s21, %s1893_s18 }
 0x51d   : > { %p1527_p7 = pnand %p1526_p4, %p1685_p5 }
 0x51e   : > { %p1532_p11 = por %p1531_p10, %p1530_p9 }
 0x51f   : > { %p1528_p8 = pneg %p1527_p7 }
 0x520   : > { %p1534_p13 = por %p1533_p12, %p1532_p11 }
 0x522   : > { %p1535_p0 = pnand %p1534_p13, %p1528_p8 }
 0x524   : > { %1538 = shalt.err (!%p1535_p0)
}
 0x525   : > { %1451 = dma.vmem_to_hbm [thread:$0]  (%p1685_p5), %s1895_s25, 16, %s1893_s18, %s1236_s12  }
 0x526 PF: > { %p1457_p1 = scmp.ge.s32.totalorder %s1573_s30, 2  ;;  %s1260_s16 = sand.u32 1, %s1561_s27  }
 0x527   : > { %s1261_s22 = scalar_lea.sflag [#allocation4], %s1260_s16 }
 0x528   : > { %p1454_p2 = pnand %p1457_p1, %p1689_p6 }
 0x52a   : > { %1556 = dma.done.wait (!%p1454_p2), %s1261_s22, 16  }
 0x52b   : > { %1558 = vsyncadd (!%p1454_p2), %s1261_s22, 4294967280  ;;  %s1954_s23 = sld [smem:[#allocation6_spill]]  ;;  %s1955_s29 = sld [smem:[#allocation7_spill]] }
 0x52c   : > { %p25_p3 = scmp.ge.s32.totalorder %s1673_s15, 4   ;;  %s1956_s27 = smov %s1565_s28 }
 0x52d   : > { %s1958_s30 = smov %s1673_s15 }
 0x52e   :  { %27 = sbr.rel (!%p25_p3) target bundleno = 6 (0x6), region = 107 }
 0x531   : > { %s1957_s28 = smov %s1954_s23 }
 0x535   :  { %1265 = vsyncpa [#allocation4], 1 }
 0x536   :  { %1267 = vsyncpa [#allocation4 + $0x1], 1 }

</bundles_post_ra>
